<compile_context>
chip_gen: v6e
topology: v6e:2x2x1
jax: 0.10.0
libtpu: 0.0.40
codegen_flags: <defaults>
</compile_context>

<pallas_src>
import numpy as np
import jax
import jax.numpy as jnp
from jax import lax
from jax.experimental import pallas as pl
from jax.experimental.pallas import tpu as pltpu

_BN_EPS = 1e-5


def _round_up(x, m):
    return ((x + m - 1) // m) * m


def _fold_bn(gamma, beta, mean, var, eps=_BN_EPS):
    scale = gamma / jnp.sqrt(var + eps)
    bias = beta - mean * scale
    return scale, bias


def _make_dsconv_kernel(*, th, wout_pad, slab_h, stride, dilation, relu):
    """Fused kernel for fixed static conv geometry.

    Refs:
      x_hbm : (N, Hp, Wp, Cin_pad)  full padded input, left in HBM (pl.ANY)
      wdw   : (3, 3, Cin_pad)       depthwise weights with BN1 scale folded in
      b1    : (1, Cin_pad)          BN1 bias
      wpw   : (Cin_pad, Cout_pad)   pointwise weights (bf16) with BN2 scale folded in
      b2    : (1, Cout_pad)         BN2 bias
      o     : (TH*Wout_pad, Cout_pad)
      slab  : (2, slab_h, Wp, Cin_pad) VMEM double buffer for the halo'd row slab
      sem   : DMA semaphores, one per slot
    """
    th_in = th * stride  # input rows consumed per output H tile (before halo)

    def kernel(x_hbm, wdw_ref, b1_ref, wpw_ref, b2_ref, o_ref, slab, sem):
        b = pl.program_id(0)
        i = pl.program_id(1)
        nh = pl.num_programs(1)
        cin_pad = wdw_ref.shape[2]

        def slab_copy(tile, slot):
            return pltpu.make_async_copy(
                x_hbm.at[b, pl.ds(tile * th_in, slab_h)],
                slab.at[slot],
                sem.at[slot])

        # Prime the pipeline at the first H tile of this image.
        @pl.when(i == 0)
        def _():
            slab_copy(0, 0).start()

        # Prefetch the next H tile's slab into the other slot (overlaps compute).
        @pl.when(i + 1 < nh)
        def _():
            slab_copy(i + 1, (i + 1) % 2).start()

        slot = i % 2
        slab_copy(i, slot).wait()

        # ---- depthwise 3x3 conv (BN1 scale already folded into the taps) ----
        if stride == 1:
            def tap(kh, kw):
                return slab[slot,
                            pl.ds(kh * dilation, th),
                            pl.ds(kw * dilation, wout_pad), :]
        else:
            def tap(kh, kw):
                return slab[slot,
                            pl.ds(kh * dilation, th, stride),
                            pl.ds(kw * dilation, wout_pad, stride), :]

        acc = jnp.zeros((th, wout_pad, cin_pad), jnp.float32)
        for kh in range(3):
            for kw in range(3):
                w_tap = wdw_ref[pl.ds(kh, 1), pl.ds(kw, 1), :]  # (1, 1, Cin_pad)
                acc = acc + tap(kh, kw) * w_tap

        # ---- BN1 bias + ReLU ----
        y = jnp.maximum(acc + b1_ref[...], 0.0)                 # (TH, Wout_pad, Cin_pad)

        # ---- pointwise 1x1 conv on the MXU (bf16 in, f32 accumulate) ----
        y2 = y.reshape(th * wout_pad, cin_pad).astype(jnp.bfloat16)
        z = jnp.dot(y2, wpw_ref[...], preferred_element_type=jnp.float32)

        # ---- BN2 bias + optional ReLU ----
        z = z + b2_ref[...]
        if relu:
            z = jnp.maximum(z, 0.0)
        o_ref[...] = z                                          # lane-dense store

    return kernel


def dsconv3x3_pallas(x_nchw, wdw_oihw, bn1, wpw_oihw, bn2,
                     *, stride=1, dilation=1, relu=True, block_h=8):
    """Fused DSConv3x3 forward. x: (N, Cin, H, W) f32 -> (N, Cout, Hout, Wout) f32."""
    n, cin, h, w = x_nchw.shape
    cout = wpw_oihw.shape[0]
    d = dilation
    p = dilation
    hout = (h + 2 * p - 2 * d - 1) // stride + 1
    wout = (w + 2 * p - 2 * d - 1) // stride + 1

    # --- tiling / padding geometry ---
    th = max(1, min(block_h, hout))               # output rows per grid step
    nh = -(-hout // th)                           # H tiles
    hout_pad = nh * th
    wout_pad = _round_up(wout, 8)                 # sublane-aligned output width
    cin_pad = _round_up(cin, 128)                 # lane-dense channels
    cout_pad = _round_up(cout, 128)

    slab_h = (th - 1) * stride + 2 * d + 1        # halo'd input rows per tile
    hp_pad = max((hout_pad - 1) * stride + 2 * d + 1, h + 2 * p)
    wp_pad = _round_up(max((wout_pad - 1) * stride + 2 * d + 1, w + 2 * p), 8)

    # --- one fused transpose + pad (conv zero pad + alignment + channel pad) ---
    x_nhwc = jnp.transpose(x_nchw, (0, 2, 3, 1)).astype(jnp.float32)
    x_pad = jnp.pad(x_nhwc, ((0, 0),
                             (p, hp_pad - h - p),
                             (p, wp_pad - w - p),
                             (0, cin_pad - cin)))

    # --- fold BN scales into the conv weights; keep only biases for the kernel ---
    s1, b1 = _fold_bn(*bn1)
    s2, b2 = _fold_bn(*bn2)
    wdw = jnp.transpose(wdw_oihw[:, 0, :, :], (1, 2, 0)) * s1            # (3,3,Cin)
    wdw = jnp.pad(wdw, ((0, 0), (0, 0), (0, cin_pad - cin))).astype(jnp.float32)
    wpw = jnp.transpose(wpw_oihw[:, :, 0, 0], (1, 0)) * s2[None, :]      # (Cin,Cout)
    wpw = jnp.pad(wpw, ((0, cin_pad - cin), (0, cout_pad - cout))).astype(jnp.bfloat16)
    b1p = jnp.pad(b1, (0, cin_pad - cin)).reshape(1, cin_pad).astype(jnp.float32)
    b2p = jnp.pad(b2, (0, cout_pad - cout)).reshape(1, cout_pad).astype(jnp.float32)

    kernel = _make_dsconv_kernel(th=th, wout_pad=wout_pad, slab_h=slab_h,
                                 stride=stride, dilation=d, relu=relu)

    out = pl.pallas_call(
        kernel,
        out_shape=jax.ShapeDtypeStruct((n, hout_pad * wout_pad, cout_pad), jnp.float32),
        grid_spec=pltpu.PrefetchScalarGridSpec(
            num_scalar_prefetch=0,
            grid=(n, nh),
            in_specs=[
                pl.BlockSpec(memory_space=pl.ANY),                       # input stays in HBM
                pl.BlockSpec((3, 3, cin_pad), lambda b, i: (0, 0, 0)),   # depthwise w (BN1 folded)
                pl.BlockSpec((1, cin_pad), lambda b, i: (0, 0)),         # BN1 bias
                pl.BlockSpec((cin_pad, cout_pad), lambda b, i: (0, 0)),  # pointwise w (bf16, BN2 folded)
                pl.BlockSpec((1, cout_pad), lambda b, i: (0, 0)),        # BN2 bias
            ],
            out_specs=pl.BlockSpec((None, th * wout_pad, cout_pad),
                                   lambda b, i: (b, i, 0)),
            scratch_shapes=[
                pltpu.VMEM((2, slab_h, wp_pad, cin_pad), jnp.float32),   # slab double buffer
                pltpu.SemaphoreType.DMA((2,)),
            ],
        ),
        compiler_params=pltpu.CompilerParams(
            # batch is parallel (megacore); H tiles are sequential so the manual
            # cross-step slab prefetch has a well-defined order.
            dimension_semantics=("parallel", "arbitrary"),
            vmem_limit_bytes=32 * 1024 * 1024,
        ),
    )(x_pad, wdw, b1p, wpw, b2p)

    out = out.reshape(n, hout_pad, wout_pad, cout_pad)[:, :hout, :wout, :cout]
    return jnp.transpose(out, (0, 3, 1, 2))


def dsconv3x3_ref(x, wdw_oihw, bn1, wpw_oihw, bn2, *, stride, dilation, relu):
    """Pure-JAX reference (matches PyTorch DSConv3x3 with inference-mode BN)."""
    p = dilation
    cin = x.shape[1]
    y = lax.conv_general_dilated(
        x, wdw_oihw, window_strides=(stride, stride),
        padding=[(p, p), (p, p)], rhs_dilation=(dilation, dilation),
        dimension_numbers=("NCHW", "OIHW", "NCHW"),
        feature_group_count=cin)
    s1, b1 = _fold_bn(*bn1)
    y = y * s1[None, :, None, None] + b1[None, :, None, None]
    y = jnp.maximum(y, 0.0)

    z = lax.conv_general_dilated(
        y, wpw_oihw, window_strides=(1, 1), padding=[(0, 0), (0, 0)],
        dimension_numbers=("NCHW", "OIHW", "NCHW"))
    s2, b2 = _fold_bn(*bn2)
    z = z * s2[None, :, None, None] + b2[None, :, None, None]
    if relu:
        z = jnp.maximum(z, 0.0)
    return z


if __name__ == "__main__":
    key = jax.random.PRNGKey(0)
    ks = jax.random.split(key, 11)

    N, CIN, COUT, H, W = 2, 4, 8, 16, 16

    x = jax.random.normal(ks[0], (N, CIN, H, W), jnp.float32)

    # Deterministic synthetic parameters (shapes from the PyTorch module's __init__).
    wdw = 0.5 * jax.random.normal(ks[1], (CIN, 1, 3, 3), jnp.float32)     # depthwise conv weight
    wpw = 0.5 * jax.random.normal(ks[2], (COUT, CIN, 1, 1), jnp.float32)  # pointwise conv weight
    bn1 = (1.0 + 0.1 * jax.random.normal(ks[3], (CIN,), jnp.float32),     # gamma
           0.1 * jax.random.normal(ks[4], (CIN,), jnp.float32),           # beta
           0.1 * jax.random.normal(ks[5], (CIN,), jnp.float32),           # running mean
           0.5 + jnp.abs(jax.random.normal(ks[6], (CIN,), jnp.float32)))  # running var
    bn2 = (1.0 + 0.1 * jax.random.normal(ks[7], (COUT,), jnp.float32),
           0.1 * jax.random.normal(ks[8], (COUT,), jnp.float32),
           0.1 * jax.random.normal(ks[9], (COUT,), jnp.float32),
           0.5 + jnp.abs(jax.random.normal(ks[10], (COUT,), jnp.float32)))

    # Exercise the default config and a strided / dilated config (relu=False on the 1x1).
    # Tolerance is loosened vs f32 because the pointwise matmul runs in bf16 on the MXU.
    for (stride, dilation, relu) in [(1, 1, True), (2, 2, False)]:
        out = dsconv3x3_pallas(x, wdw, bn1, wpw, bn2,
                               stride=stride, dilation=dilation, relu=relu)
        out = jax.block_until_ready(out)
        ref = dsconv3x3_ref(x, wdw, bn1, wpw, bn2,
                            stride=stride, dilation=dilation, relu=relu)
        np.testing.assert_allclose(np.asarray(out), np.asarray(ref),
                                   rtol=5e-2, atol=5e-2)

    print("KERNEL_OK")
</pallas_src>

<mosaic_0001>
module attributes {stable_mosaic.version = 11 : i64} {
  func.func @kernel(%arg0: i32, %arg1: i32, %arg2: memref<2x18x24x128xf32, #tpu.memory_space<any>>, %arg3: memref<3x3x128xf32, #tpu.memory_space<vmem>>, %arg4: memref<1x128xf32, #tpu.memory_space<vmem>>, %arg5: memref<128x128xbf16, #tpu.memory_space<vmem>>, %arg6: memref<1x128xf32, #tpu.memory_space<vmem>>, %arg7: memref<1x128x128xf32, #tpu.memory_space<vmem>>, %arg8: memref<2x10x24x128xf32, #tpu.memory_space<vmem>>, %arg9: memref<2x!tpu.dma_semaphore, #tpu.memory_space<semaphore_mem>>) attributes {dimension_semantics = [#tpu.dimension_semantics<parallel>, #tpu.dimension_semantics<arbitrary>], iteration_bounds = array<i64: 2, 2>, scalar_prefetch = 0 : i64, scratch_operands = 2 : i64, tpu.core_type = #tpu.core_type<tc>, window_params = [{}, {pipeline_mode = #tpu.pipeline_mode<synchronous>, transform_indices = @transform_1, window_bounds = array<i64: 3, 3, 128>}, {pipeline_mode = #tpu.pipeline_mode<synchronous>, transform_indices = @transform_2, window_bounds = array<i64: 1, 128>}, {pipeline_mode = #tpu.pipeline_mode<synchronous>, transform_indices = @transform_3, window_bounds = array<i64: 128, 128>}, {pipeline_mode = #tpu.pipeline_mode<synchronous>, transform_indices = @transform_4, window_bounds = array<i64: 1, 128>}, {transform_indices = @transform_5, window_bounds = array<i64: 1, 128, 128>}]} {
    %c0_i32 = arith.constant 0 : i32
    %0 = arith.cmpi eq, %arg1, %c0_i32 : i32
    %1 = arith.extui %0 : i1 to i32
    %c0_i32_0 = arith.constant 0 : i32
    %2 = arith.cmpi ne, %1, %c0_i32_0 : i32
    scf.if %2 {
      %c0_i32_76 = arith.constant 0 : i32
      %c0_i32_77 = arith.constant 0 : i32
      %c0_i32_78 = arith.constant 0 : i32
      %c0_i32_79 = arith.constant 0 : i32
      %c0_i32_80 = arith.constant 0 : i32
      %106 = tpu.memref_slice %arg2[%arg0, %c0_i32_78, %c0_i32_79, %c0_i32_80] : memref<2x18x24x128xf32, #tpu.memory_space<any>> -> memref<1x10x24x128xf32, #tpu.memory_space<any>>
      %107 = tpu.memref_squeeze %106 : memref<1x10x24x128xf32, #tpu.memory_space<any>> -> memref<10x24x128xf32, #tpu.memory_space<any>>
      %c0_i32_81 = arith.constant 0 : i32
      %c0_i32_82 = arith.constant 0 : i32
      %c0_i32_83 = arith.constant 0 : i32
      %108 = tpu.memref_slice %arg8[%c0_i32_76, %c0_i32_81, %c0_i32_82, %c0_i32_83] : memref<2x10x24x128xf32, #tpu.memory_space<vmem>> -> memref<1x10x24x128xf32, #tpu.memory_space<vmem>>
      %109 = tpu.memref_squeeze %108 : memref<1x10x24x128xf32, #tpu.memory_space<vmem>> -> memref<10x24x128xf32, #tpu.memory_space<vmem>>
      %110 = tpu.memref_slice %arg9[%c0_i32_77] : memref<2x!tpu.dma_semaphore, #tpu.memory_space<semaphore_mem>> -> memref<1x!tpu.dma_semaphore, #tpu.memory_space<semaphore_mem>>
      %111 = tpu.memref_squeeze %110 : memref<1x!tpu.dma_semaphore, #tpu.memory_space<semaphore_mem>> -> memref<!tpu.dma_semaphore, #tpu.memory_space<semaphore_mem>>
      tpu.enqueue_dma source(%107 : memref<10x24x128xf32, #tpu.memory_space<any>>) target(%109 : memref<10x24x128xf32, #tpu.memory_space<vmem>>) target_semaphore(%111 : memref<!tpu.dma_semaphore, #tpu.memory_space<semaphore_mem>>)
    } else {
    }
    %c1_i32 = arith.constant 1 : i32
    %3 = arith.addi %arg1, %c1_i32 : i32
    %c2_i32 = arith.constant 2 : i32
    %4 = arith.cmpi slt, %3, %c2_i32 : i32
    %5 = arith.extui %4 : i1 to i32
    %c0_i32_1 = arith.constant 0 : i32
    %6 = arith.cmpi ne, %5, %c0_i32_1 : i32
    scf.if %6 {
      %c1_i32_76 = arith.constant 1 : i32
      %106 = arith.addi %arg1, %c1_i32_76 : i32
      %c1_i32_77 = arith.constant 1 : i32
      %107 = arith.addi %arg1, %c1_i32_77 : i32
      %c2_i32_78 = arith.constant 2 : i32
      %c0_i32_79 = arith.constant 0 : i32
      %108 = arith.cmpi eq, %c2_i32_78, %c0_i32_79 : i32
      %c1_i32_80 = arith.constant 1 : i32
      %109 = arith.select %108, %c1_i32_80, %c2_i32_78 : i32
      %110 = arith.remsi %107, %109 : i32
      %c0_i32_81 = arith.constant 0 : i32
      %111 = arith.cmpi ne, %110, %c0_i32_81 : i32
      %c0_i32_82 = arith.constant 0 : i32
      %112 = arith.cmpi slt, %110, %c0_i32_82 : i32
      %c0_i32_83 = arith.constant 0 : i32
      %113 = arith.cmpi slt, %109, %c0_i32_83 : i32
      %114 = arith.xori %112, %113 : i1
      %115 = arith.andi %114, %111 : i1
      %116 = arith.addi %110, %109 : i32
      %117 = arith.select %115, %116, %110 : i32
      %c8_i32_84 = arith.constant 8 : i32
      %118 = arith.muli %106, %c8_i32_84 : i32
      %c0_i32_85 = arith.constant 0 : i32
      %c0_i32_86 = arith.constant 0 : i32
      %119 = tpu.memref_slice %arg2[%arg0, %118, %c0_i32_85, %c0_i32_86] : memref<2x18x24x128xf32, #tpu.memory_space<any>> -> memref<1x10x24x128xf32, #tpu.memory_space<any>>
      %120 = tpu.memref_squeeze %119 : memref<1x10x24x128xf32, #tpu.memory_space<any>> -> memref<10x24x128xf32, #tpu.memory_space<any>>
      %c0_i32_87 = arith.constant 0 : i32
      %c0_i32_88 = arith.constant 0 : i32
      %c0_i32_89 = arith.constant 0 : i32
      %121 = tpu.memref_slice %arg8[%117, %c0_i32_87, %c0_i32_88, %c0_i32_89] : memref<2x10x24x128xf32, #tpu.memory_space<vmem>> -> memref<1x10x24x128xf32, #tpu.memory_space<vmem>>
      %122 = tpu.memref_squeeze %121 : memref<1x10x24x128xf32, #tpu.memory_space<vmem>> -> memref<10x24x128xf32, #tpu.memory_space<vmem>>
      %123 = tpu.memref_slice %arg9[%117] : memref<2x!tpu.dma_semaphore, #tpu.memory_space<semaphore_mem>> -> memref<1x!tpu.dma_semaphore, #tpu.memory_space<semaphore_mem>>
      %124 = tpu.memref_squeeze %123 : memref<1x!tpu.dma_semaphore, #tpu.memory_space<semaphore_mem>> -> memref<!tpu.dma_semaphore, #tpu.memory_space<semaphore_mem>>
      tpu.enqueue_dma source(%120 : memref<10x24x128xf32, #tpu.memory_space<any>>) target(%122 : memref<10x24x128xf32, #tpu.memory_space<vmem>>) target_semaphore(%124 : memref<!tpu.dma_semaphore, #tpu.memory_space<semaphore_mem>>)
    } else {
    }
    %c2_i32_2 = arith.constant 2 : i32
    %c0_i32_3 = arith.constant 0 : i32
    %7 = arith.cmpi eq, %c2_i32_2, %c0_i32_3 : i32
    %c1_i32_4 = arith.constant 1 : i32
    %8 = arith.select %7, %c1_i32_4, %c2_i32_2 : i32
    %9 = arith.remsi %arg1, %8 : i32
    %c0_i32_5 = arith.constant 0 : i32
    %10 = arith.cmpi ne, %9, %c0_i32_5 : i32
    %c0_i32_6 = arith.constant 0 : i32
    %11 = arith.cmpi slt, %9, %c0_i32_6 : i32
    %c0_i32_7 = arith.constant 0 : i32
    %12 = arith.cmpi slt, %8, %c0_i32_7 : i32
    %13 = arith.xori %11, %12 : i1
    %14 = arith.andi %13, %10 : i1
    %15 = arith.addi %9, %8 : i32
    %16 = arith.select %14, %15, %9 : i32
    %c8_i32 = arith.constant 8 : i32
    %17 = arith.muli %arg1, %c8_i32 : i32
    %c0_i32_8 = arith.constant 0 : i32
    %c0_i32_9 = arith.constant 0 : i32
    %18 = tpu.memref_slice %arg2[%arg0, %17, %c0_i32_8, %c0_i32_9] : memref<2x18x24x128xf32, #tpu.memory_space<any>> -> memref<1x10x24x128xf32, #tpu.memory_space<any>>
    %19 = tpu.memref_squeeze %18 : memref<1x10x24x128xf32, #tpu.memory_space<any>> -> memref<10x24x128xf32, #tpu.memory_space<any>>
    %c0_i32_10 = arith.constant 0 : i32
    %c0_i32_11 = arith.constant 0 : i32
    %c0_i32_12 = arith.constant 0 : i32
    %20 = tpu.memref_slice %arg8[%16, %c0_i32_10, %c0_i32_11, %c0_i32_12] : memref<2x10x24x128xf32, #tpu.memory_space<vmem>> -> memref<1x10x24x128xf32, #tpu.memory_space<vmem>>
    %21 = tpu.memref_squeeze %20 : memref<1x10x24x128xf32, #tpu.memory_space<vmem>> -> memref<10x24x128xf32, #tpu.memory_space<vmem>>
    %22 = tpu.memref_slice %arg9[%16] : memref<2x!tpu.dma_semaphore, #tpu.memory_space<semaphore_mem>> -> memref<1x!tpu.dma_semaphore, #tpu.memory_space<semaphore_mem>>
    %23 = tpu.memref_squeeze %22 : memref<1x!tpu.dma_semaphore, #tpu.memory_space<semaphore_mem>> -> memref<!tpu.dma_semaphore, #tpu.memory_space<semaphore_mem>>
    tpu.wait_dma2 semaphore(%23 : memref<!tpu.dma_semaphore, #tpu.memory_space<semaphore_mem>>) src(%19 : memref<10x24x128xf32, #tpu.memory_space<any>>) dst(%21 : memref<10x24x128xf32, #tpu.memory_space<vmem>>)
    %cst = arith.constant 0.000000e+00 : f32
    %24 = vector.broadcast %cst : f32 to vector<8x16x128xf32>
    %c0 = arith.constant 0 : index
    %c0_13 = arith.constant 0 : index
    %c0_14 = arith.constant 0 : index
    %25 = vector.load %arg3[%c0, %c0_13, %c0_14] : memref<3x3x128xf32, #tpu.memory_space<vmem>>, vector<1x1x128xf32>
    %26 = arith.index_cast %16 : i32 to index
    %c0_15 = arith.constant 0 : index
    %c0_16 = arith.constant 0 : index
    %c0_17 = arith.constant 0 : index
    %27 = vector.load %arg8[%26, %c0_15, %c0_16, %c0_17] : memref<2x10x24x128xf32, #tpu.memory_space<vmem>>, vector<1x8x16x128xf32>
    %28 = vector.shape_cast %27 : vector<1x8x16x128xf32> to vector<8x16x128xf32>
    %29 = vector.broadcast %25 : vector<1x1x128xf32> to vector<8x16x128xf32>
    %30 = arith.mulf %28, %29 : vector<8x16x128xf32>
    %31 = arith.addf %24, %30 : vector<8x16x128xf32>
    %c0_18 = arith.constant 0 : index
    %c1 = arith.constant 1 : index
    %c0_19 = arith.constant 0 : index
    %32 = vector.load %arg3[%c0_18, %c1, %c0_19] : memref<3x3x128xf32, #tpu.memory_space<vmem>>, vector<1x1x128xf32>
    %33 = arith.index_cast %16 : i32 to index
    %c0_20 = arith.constant 0 : index
    %c1_21 = arith.constant 1 : index
    %c0_22 = arith.constant 0 : index
    %34 = vector.load %arg8[%33, %c0_20, %c1_21, %c0_22] : memref<2x10x24x128xf32, #tpu.memory_space<vmem>>, vector<1x8x16x128xf32>
    %35 = vector.shape_cast %34 : vector<1x8x16x128xf32> to vector<8x16x128xf32>
    %36 = vector.broadcast %32 : vector<1x1x128xf32> to vector<8x16x128xf32>
    %37 = arith.mulf %35, %36 : vector<8x16x128xf32>
    %38 = arith.addf %31, %37 : vector<8x16x128xf32>
    %c0_23 = arith.constant 0 : index
    %c2 = arith.constant 2 : index
    %c0_24 = arith.constant 0 : index
    %39 = vector.load %arg3[%c0_23, %c2, %c0_24] : memref<3x3x128xf32, #tpu.memory_space<vmem>>, vector<1x1x128xf32>
    %40 = arith.index_cast %16 : i32 to index
    %c0_25 = arith.constant 0 : index
    %c2_26 = arith.constant 2 : index
    %c0_27 = arith.constant 0 : index
    %41 = vector.load %arg8[%40, %c0_25, %c2_26, %c0_27] : memref<2x10x24x128xf32, #tpu.memory_space<vmem>>, vector<1x8x16x128xf32>
    %42 = vector.shape_cast %41 : vector<1x8x16x128xf32> to vector<8x16x128xf32>
    %43 = vector.broadcast %39 : vector<1x1x128xf32> to vector<8x16x128xf32>
    %44 = arith.mulf %42, %43 : vector<8x16x128xf32>
    %45 = arith.addf %38, %44 : vector<8x16x128xf32>
    %c1_28 = arith.constant 1 : index
    %c0_29 = arith.constant 0 : index
    %c0_30 = arith.constant 0 : index
    %46 = vector.load %arg3[%c1_28, %c0_29, %c0_30] : memref<3x3x128xf32, #tpu.memory_space<vmem>>, vector<1x1x128xf32>
    %47 = arith.index_cast %16 : i32 to index
    %c1_31 = arith.constant 1 : index
    %c0_32 = arith.constant 0 : index
    %c0_33 = arith.constant 0 : index
    %48 = vector.load %arg8[%47, %c1_31, %c0_32, %c0_33] : memref<2x10x24x128xf32, #tpu.memory_space<vmem>>, vector<1x8x16x128xf32>
    %49 = vector.shape_cast %48 : vector<1x8x16x128xf32> to vector<8x16x128xf32>
    %50 = vector.broadcast %46 : vector<1x1x128xf32> to vector<8x16x128xf32>
    %51 = arith.mulf %49, %50 : vector<8x16x128xf32>
    %52 = arith.addf %45, %51 : vector<8x16x128xf32>
    %c1_34 = arith.constant 1 : index
    %c1_35 = arith.constant 1 : index
    %c0_36 = arith.constant 0 : index
    %53 = vector.load %arg3[%c1_34, %c1_35, %c0_36] : memref<3x3x128xf32, #tpu.memory_space<vmem>>, vector<1x1x128xf32>
    %54 = arith.index_cast %16 : i32 to index
    %c1_37 = arith.constant 1 : index
    %c1_38 = arith.constant 1 : index
    %c0_39 = arith.constant 0 : index
    %55 = vector.load %arg8[%54, %c1_37, %c1_38, %c0_39] : memref<2x10x24x128xf32, #tpu.memory_space<vmem>>, vector<1x8x16x128xf32>
    %56 = vector.shape_cast %55 : vector<1x8x16x128xf32> to vector<8x16x128xf32>
    %57 = vector.broadcast %53 : vector<1x1x128xf32> to vector<8x16x128xf32>
    %58 = arith.mulf %56, %57 : vector<8x16x128xf32>
    %59 = arith.addf %52, %58 : vector<8x16x128xf32>
    %c1_40 = arith.constant 1 : index
    %c2_41 = arith.constant 2 : index
    %c0_42 = arith.constant 0 : index
    %60 = vector.load %arg3[%c1_40, %c2_41, %c0_42] : memref<3x3x128xf32, #tpu.memory_space<vmem>>, vector<1x1x128xf32>
    %61 = arith.index_cast %16 : i32 to index
    %c1_43 = arith.constant 1 : index
    %c2_44 = arith.constant 2 : index
    %c0_45 = arith.constant 0 : index
    %62 = vector.load %arg8[%61, %c1_43, %c2_44, %c0_45] : memref<2x10x24x128xf32, #tpu.memory_space<vmem>>, vector<1x8x16x128xf32>
    %63 = vector.shape_cast %62 : vector<1x8x16x128xf32> to vector<8x16x128xf32>
    %64 = vector.broadcast %60 : vector<1x1x128xf32> to vector<8x16x128xf32>
    %65 = arith.mulf %63, %64 : vector<8x16x128xf32>
    %66 = arith.addf %59, %65 : vector<8x16x128xf32>
    %c2_46 = arith.constant 2 : index
    %c0_47 = arith.constant 0 : index
    %c0_48 = arith.constant 0 : index
    %67 = vector.load %arg3[%c2_46, %c0_47, %c0_48] : memref<3x3x128xf32, #tpu.memory_space<vmem>>, vector<1x1x128xf32>
    %68 = arith.index_cast %16 : i32 to index
    %c2_49 = arith.constant 2 : index
    %c0_50 = arith.constant 0 : index
    %c0_51 = arith.constant 0 : index
    %69 = vector.load %arg8[%68, %c2_49, %c0_50, %c0_51] : memref<2x10x24x128xf32, #tpu.memory_space<vmem>>, vector<1x8x16x128xf32>
    %70 = vector.shape_cast %69 : vector<1x8x16x128xf32> to vector<8x16x128xf32>
    %71 = vector.broadcast %67 : vector<1x1x128xf32> to vector<8x16x128xf32>
    %72 = arith.mulf %70, %71 : vector<8x16x128xf32>
    %73 = arith.addf %66, %72 : vector<8x16x128xf32>
    %c2_52 = arith.constant 2 : index
    %c1_53 = arith.constant 1 : index
    %c0_54 = arith.constant 0 : index
    %74 = vector.load %arg3[%c2_52, %c1_53, %c0_54] : memref<3x3x128xf32, #tpu.memory_space<vmem>>, vector<1x1x128xf32>
    %75 = arith.index_cast %16 : i32 to index
    %c2_55 = arith.constant 2 : index
    %c1_56 = arith.constant 1 : index
    %c0_57 = arith.constant 0 : index
    %76 = vector.load %arg8[%75, %c2_55, %c1_56, %c0_57] : memref<2x10x24x128xf32, #tpu.memory_space<vmem>>, vector<1x8x16x128xf32>
    %77 = vector.shape_cast %76 : vector<1x8x16x128xf32> to vector<8x16x128xf32>
    %78 = vector.broadcast %74 : vector<1x1x128xf32> to vector<8x16x128xf32>
    %79 = arith.mulf %77, %78 : vector<8x16x128xf32>
    %80 = arith.addf %73, %79 : vector<8x16x128xf32>
    %c2_58 = arith.constant 2 : index
    %c2_59 = arith.constant 2 : index
    %c0_60 = arith.constant 0 : index
    %81 = vector.load %arg3[%c2_58, %c2_59, %c0_60] : memref<3x3x128xf32, #tpu.memory_space<vmem>>, vector<1x1x128xf32>
    %82 = arith.index_cast %16 : i32 to index
    %c2_61 = arith.constant 2 : index
    %c2_62 = arith.constant 2 : index
    %c0_63 = arith.constant 0 : index
    %83 = vector.load %arg8[%82, %c2_61, %c2_62, %c0_63] : memref<2x10x24x128xf32, #tpu.memory_space<vmem>>, vector<1x8x16x128xf32>
    %84 = vector.shape_cast %83 : vector<1x8x16x128xf32> to vector<8x16x128xf32>
    %85 = vector.broadcast %81 : vector<1x1x128xf32> to vector<8x16x128xf32>
    %86 = arith.mulf %84, %85 : vector<8x16x128xf32>
    %87 = arith.addf %80, %86 : vector<8x16x128xf32>
    %c0_64 = arith.constant 0 : index
    %c0_65 = arith.constant 0 : index
    %88 = vector.load %arg4[%c0_64, %c0_65] : memref<1x128xf32, #tpu.memory_space<vmem>>, vector<1x128xf32>
    %89 = vector.shape_cast %88 : vector<1x128xf32> to vector<1x1x128xf32>
    %90 = vector.broadcast %89 : vector<1x1x128xf32> to vector<8x16x128xf32>
    %91 = arith.addf %87, %90 : vector<8x16x128xf32>
    %cst_66 = arith.constant 0.000000e+00 : f32
    %92 = vector.broadcast %cst_66 : f32 to vector<8x16x128xf32>
    %93 = arith.maximumf %91, %92 : vector<8x16x128xf32>
    %94 = vector.shape_cast %93 : vector<8x16x128xf32> to vector<128x128xf32>
    %95 = arith.truncf %94 : vector<128x128xf32> to vector<128x128xbf16>
    %c0_67 = arith.constant 0 : index
    %c0_68 = arith.constant 0 : index
    %96 = vector.load %arg5[%c0_67, %c0_68] : memref<128x128xbf16, #tpu.memory_space<vmem>>, vector<128x128xbf16>
    %cst_69 = arith.constant dense<0.000000e+00> : vector<128x128xf32>
    %97 = tpu.matmul %95, %96, %cst_69 {dimension_numbers = #tpu.dot_dimension_numbers<[1], [0], [0], [1], [0, 0, 1, 1], [], []>} : vector<128x128xbf16>, vector<128x128xbf16>, vector<128x128xf32> -> vector<128x128xf32>
    %c0_70 = arith.constant 0 : index
    %c0_71 = arith.constant 0 : index
    %98 = vector.load %arg6[%c0_70, %c0_71] : memref<1x128xf32, #tpu.memory_space<vmem>>, vector<1x128xf32>
    %99 = vector.broadcast %98 : vector<1x128xf32> to vector<128x128xf32>
    %100 = arith.addf %97, %99 : vector<128x128xf32>
    %cst_72 = arith.constant 0.000000e+00 : f32
    %101 = vector.broadcast %cst_72 : f32 to vector<128x128xf32>
    %102 = arith.maximumf %100, %101 : vector<128x128xf32>
    %c0_73 = arith.constant 0 : index
    %c0_74 = arith.constant 0 : index
    %c0_75 = arith.constant 0 : index
    %103 = vector.load %arg7[%c0_73, %c0_74, %c0_75] : memref<1x128x128xf32, #tpu.memory_space<vmem>>, vector<1x128x128xf32>
    %104 = vector.shape_cast %103 : vector<1x128x128xf32> to vector<128x128xf32>
    %105 = vector.shape_cast %102 : vector<128x128xf32> to vector<1x128x128xf32>
    tpu.vector_store %arg7[%c0_73, %c0_74, %c0_75], %105 {strides = array<i32>} : memref<1x128x128xf32, #tpu.memory_space<vmem>>, vector<1x128x128xf32>,
    return
  }
  func.func @transform_1(%arg0: i32, %arg1: i32) -> (i32, i32, i32) {
    %c0_i32 = arith.constant 0 : i32
    %c0_i32_0 = arith.constant 0 : i32
    %c0_i32_1 = arith.constant 0 : i32
    %c0_i32_2 = arith.constant 0 : i32
    return %c0_i32, %c0_i32_0, %c0_i32_1 : i32, i32, i32
  }
  func.func @transform_2(%arg0: i32, %arg1: i32) -> (i32, i32) {
    %c0_i32 = arith.constant 0 : i32
    %c0_i32_0 = arith.constant 0 : i32
    %c0_i32_1 = arith.constant 0 : i32
    return %c0_i32, %c0_i32_0 : i32, i32
  }
  func.func @transform_3(%arg0: i32, %arg1: i32) -> (i32, i32) {
    %c0_i32 = arith.constant 0 : i32
    %c0_i32_0 = arith.constant 0 : i32
    %c0_i32_1 = arith.constant 0 : i32
    return %c0_i32, %c0_i32_0 : i32, i32
  }
  func.func @transform_4(%arg0: i32, %arg1: i32) -> (i32, i32) {
    %c0_i32 = arith.constant 0 : i32
    %c0_i32_0 = arith.constant 0 : i32
    %c0_i32_1 = arith.constant 0 : i32
    return %c0_i32, %c0_i32_0 : i32, i32
  }
  func.func @transform_5(%arg0: i32, %arg1: i32) -> (i32, i32, i32) {
    %c0_i32 = arith.constant 0 : i32
    %c0_i32_0 = arith.constant 0 : i32
    return %arg0, %arg1, %c0_i32 : i32, i32, i32
  }
}

</mosaic_0001>

<bundles_post_ra>
// kernel: tpu_custom_call.1
= control target key start
LH: loop header
LB: loop body
LE: loop exit
PB: predicated region body
PF: predicated region fallthrough
CT: control target
= control target key end

     0   :  { %s2497_s0 = inlined_call_operand.hbm [shape: f32[2,18,24,128], index: 0, kind: input, shape index: {}]   ;;  %s2498_s1 = inlined_call_operand.hbm [shape: f32[3,3,128], index: 1, kind: input, shape index: {}]   ;;  %s2499_s2 = inlined_call_operand.vmem [shape: f32[1,128], index: 2, kind: input, shape index: {}]   ;;  %s2500_s3 = inlined_call_operand.hbm [shape: bf16[128,128], index: 3, kind: input, shape index: {}]   ;;  %s2501_s4 = inlined_call_operand.vmem [shape: f32[1,128], index: 4, kind: input, shape index: {}]   ;;  %s2502_s5 = inlined_call_operand.hbm [shape: f32[2,256,128], index: 5, kind: output, shape index: {}]  }
   0x1   :  { %2516 = sst [smem:[#allocation30_spill]] %s2498_s1 }
   0x2   :  { %2517 = sst [smem:[#allocation31_spill]] %s2500_s3 }
   0x3   :  { %10 = vsyncpa [#allocation5], 0 }
   0x4   :  { %11 = vsyncpa [#allocation8], 0 }
   0x5   :  { %12 = vsyncpa [#allocation6], 0 }
   0x6   :  { %14 = vsyncpa [#allocation6 + $0x1], 0  ;;  %s1727_s18 = smov 0   ;;  %s1729_s19 = smov 0  }
   0x7   :  { %s1731_s20 = smov 0   ;;  %s1733_s21 = smov 0  }
   0x8   :  { %s1735_s22 = smov 0   ;;  %s1737_s23 = smov 0  }
   0x9   :  { %s1739_s24 = smov 0   ;;  %s1741_s25 = smov 0  }
   0xa LB: > { %2518 = sst [smem:[#allocation20_spill]] %s1679_s23  ;;  %s1162_s26 = sadd.s32 4294967295, %s1687_s25   ;;  %s1687_s25 = sphi %s1741_s25, %s20_s25   ;;  %s1683_s24 = sphi %s1739_s24, %s2549_s24   ;;  %s1679_s23 = sphi %s1737_s23, %s2548_s23   ;;  %s1675_s22 = sphi %s1735_s22, %s2547_s22   ;;  %s1671_s21 = sphi %s1733_s21, %s2546_s21   ;;  %s1667_s20 = sphi %s1731_s20, %s2552_s20   ;;  %s1663_s19 = sphi %s1729_s19, %s2551_s19   ;;  %s1659_s18 = sphi %s1727_s18, %s2550_s18  }
   0xb   : > { %2519 = sst [smem:[#allocation21_spill]] %s1683_s24  ;;  %s1163_s27 = sadd.s32 4294967294, %s1687_s25  }
   0xc   : > { %s29_s28 = sadd.s32 1, %s1679_s23  ;;  %s32_s29 = sadd.s32 1, %s1683_s24 }
   0xd   : > { %p30_p0 = scmp.ge.s32.totalorder %s29_s28, 2  ;;  %s125_s30 = sadd.s32 1, %s1667_s20 }
   0xe   : > { %p135_p1 = scmp.ne.s32.totalorder %s1667_s20, %s1663_s19  ;;  %p136_p2 = scmp.eq.s32.totalorder %s1162_s26, 3 }
   0xf   : > { %s2554_s28 = smov (%p30_p0, %s29_s28), 0  ;;  %s2556_s29 = smov (!%p30_p0, %s32_s29), %s1683_s24 }
  0x10   : > { %2520 = sst [smem:[#allocation22_spill]] %s2554_s28  ;;  %s121_s6 = ssub.s32 %s1679_s23, %s2554_s28 }
  0x11   : > { %p1779_p3 = por %p136_p2, %p135_p1  ;;  %p34_p4 = scmp.ge.s32.totalorder %s2556_s29, 2 }
  0x12   : > { %p141_p5 = scmp.ne.s32.totalorder %s1663_s19, %s1659_s18  ;;  %p142_p6 = scmp.eq.s32.totalorder %s1163_s27, 3 }
  0x13   : > { %p1164_p7 = scmp.ge.s32.totalorder %s1687_s25, 1  ;;  %s2558_s29 = smov (%p34_p4, %s2556_s29), 0 }
  0x14   : > { %2522 = sst [smem:[#allocation23_spill]] %s2558_s29  ;;  %p1788_p8 = por %p142_p6, %p141_p5 }
  0x15   : > { %p149_p9 = scmp.lt.s32.totalorder %s1687_s25, 5  ;;  %s120_s9 = ssub.s32 %s1683_s24, %s2558_s29 }
  0x16   : > { %s2523_s8 = scalar_select %p1788_p8, 1, 0 }
  0x17   : > { %s122_s10 = sor.u32 %s121_s6, %s120_s9  ;;  %p1795_p10 = pnand %p1164_p7, %p149_p9 }
  0x18   : > { %p123_p11 = scmp.eq.s32.totalorder %s122_s10, 0  ;;  %p1799_p12 = scmp.eq.s32.totalorder %s1162_s26, 0 }
  0x19   : > { %p1383_p13 = pneg %p1795_p10  ;;  %s1689_s14 = smov [#allocation4]  }
  0x1a   : > { %s1806_s13 = scalar_select %p123_p11, %s1667_s20, %s125_s30  }
  0x1b   : > { %s161_s15 = sshll.u32 %s1689_s14, 4  ;;  %p1810_p0 = pnand %p1799_p12, %p1383_p13  ;;  %s162_s15 = int_to_ptr.vmem [resolvable:$true] %s161_s15 }
  0x1c   : > { %s1491_s17 = scalar_lea.vmem %s162_s15, 192  ;;  %p1499_p6 = scmp.lt.s32.totalorder %s162_s15, %s162_s15 }
  0x1d   : > { %p1482_p1 = pneg %p1810_p0  ;;  %p1492_p2 = scmp.ne.s32.totalorder %s162_s15, %s1491_s17 }
  0x1e   : > { %p1500_p7 = scmp.lt.s32.totalorder %s1491_s17, %s1491_s17 }
  0x1f   : > { %p1494_p4 = pnand %p1492_p2, %p1482_p1 }
  0x20   : > { %p1501_p9 = por %p1500_p7, %p1499_p6 }
  0x21   : > { %p1495_p5 = pneg %p1494_p4 }
  0x23   : > { %p1502_p11 = pnand %p1501_p9, %p1495_p5 }
  0x25   : > { %1505 = shalt.err (!%p1502_p11)
}
  0x26   : > { %s1690_s26 = smov 64   ;;  %s1691_s27 = smov 4  }
  0x27   : > { %s2527_s1 = sld [smem:[#allocation30_spill]]  ;;  %s1692_s9 = smov [#allocation7]  }
  0x28   : > { %s177_s10 = sshll.u32 %s1692_s9, 4  ;;  %s178_s10 = int_to_ptr.vmem [resolvable:$true] %s177_s10 }
  0x29   : > { %s1517_s14 = scalar_lea.vmem %s178_s10, 1024  ;;  %p1525_p5 = scmp.lt.s32.totalorder %s178_s10, %s178_s10 }
  0x2a   : > { %p1518_p13 = scmp.ne.s32.totalorder %s178_s10, %s1517_s14  ;;  %p1526_p6 = scmp.lt.s32.totalorder %s1517_s14, %s1517_s14 }
  0x2c   : > { %p1520_p2 = pnand %p1518_p13, %p1482_p1  ;;  %p1527_p7 = por %p1526_p6, %p1525_p5 }
  0x2d   : > { %1386 = dma.hbm_to_vmem [thread:$0]  (!%p1810_p0), %s2527_s1, 192, %s162_s15, [#allocation5], %s1690_s26, %s1690_s26, %s1691_s27  }
  0x2e   : > { %p1521_p4 = pneg %p1520_p2 }
  0x30   : > { %p1528_p9 = pnand %p1527_p7, %p1521_p4 }
  0x32   : > { %1531 = shalt.err (!%p1528_p9)
}
  0x33   : > { %s2528_s3 = sld [smem:[#allocation31_spill]] }
  0x35   : > { %196 = sbr.rel (%p1795_p10) target bundleno = 442 (0x1ba), region = 36 }
  0x39   : > { %1389 = dma.hbm_to_vmem [thread:$0]  (!%p1810_p0), %s2528_s3, 1024, %s178_s10, [#allocation8], %s1690_s26, %s1690_s26, %s1691_s27  }
  0x3a   : > { %1644 = dma.done.wait (%p1799_p12), [#allocation5], 192  }
  0x3b   : > { %1646 = vsyncadd (%p1799_p12), [#allocation5], 4294967104 }
  0x3c   : > { %1648 = dma.done.wait (%p1799_p12), [#allocation8], 1024  }
  0x3d   : > { %1650 = vsyncadd (%p1799_p12), [#allocation8], 4294966272  ;;  %s2504_s29 = sand.u32 1, %s1663_s19   ;;  %p1398_p10 = scmp.eq.s32.totalorder %s1671_s21, 0 }
  0x3e   : > { %s1845_s11 = sshll.u32 %s2504_s29, 7  ;;  %s1304_s15 = smul.u32 6912, %s1675_s22 }
  0x3f   : > { %s1850_s16 = sadd.s32 1, %s1671_s21  ;;  %s1693_s12 = smov [#allocation2]  }
  0x40   : > { %s229_s30 = scalar_lea.hbm %s2497_s0, %s1304_s15  ;;  %s237_s6 = sshll.u32 %s1693_s12, 4  ;;  %s1855_s6 = int_to_ptr.vmem [resolvable:$true] %s237_s6 }
  0x41   : > { %s1532_s9 = scalar_lea.hbm %s229_s30, 3840  ;;  %s2506_s17 = scalar_lea.hbm %s2497_s0, 13824 }
  0x42   : > { %p1533_p12 = scmp.ne.s32.totalorder %s229_s30, %s1532_s9  ;;  %p1537_p11 = scmp.lt.s32.totalorder %s229_s30, %s2497_s0 }
  0x43   : > { %p1538_p13 = scmp.lt.s32.totalorder %s2506_s17, %s1532_s9 }
  0x44   : > { %p1534_p0 = pnand %p1533_p12, %p1398_p10 }
  0x45   : > { %p1539_p2 = por %p1538_p13, %p1537_p11 }
  0x46   : > { %p1535_p1 = pneg %p1534_p0 }
  0x48   : > { %p1540_p4 = pnand %p1539_p2, %p1535_p1 }
  0x4a   : > { %1543 = shalt.err (!%p1540_p4)  }
  0x4b   : > { %s1544_s15 = scalar_lea.vmem %s1855_s6, 3840  ;;  %s2505_s1 = scalar_lea.vmem %s1855_s6, 7680 }
  0x4c   : > { %p1545_p5 = scmp.ne.s32.totalorder %s1855_s6, %s1544_s15  ;;  %p1551_p9 = scmp.lt.s32.totalorder %s1855_s6, %s1855_s6 }
  0x4d   : > { %p1552_p12 = scmp.lt.s32.totalorder %s2505_s1, %s1544_s15 }
  0x4e   : > { %p1546_p6 = pnand %p1545_p5, %p1398_p10 }
  0x4f   : > { %p1553_p0 = por %p1552_p12, %p1551_p9 }
  0x50   : > { %p1547_p7 = pneg %p1546_p6 }
  0x52   : > { %p1554_p11 = pnand %p1553_p0, %p1547_p7 }
  0x54   : > { %1557 = shalt.err (!%p1554_p11)  }
  0x55   : > { %1378 = dma.hbm_to_vmem [thread:$0]  (%p1398_p10), %s229_s30, 3840, %s1855_s6, [#allocation3] }
  0x56   : > { %p246_p1 = scmp.lt.s32.totalorder %s1850_s16, 0  ;;  %s247_s3 = ssub.s32 0, %s1850_s16 }
  0x57   : > { %s1089_s29 = smul.u32 192, %s1671_s21  ;;  %s1174_s27 = smin.u32 %s247_s3, %s1850_s16 }
  0x58   : > { %s1090_s12 = smul.u32 432, %s1675_s22  ;;  %s249_s9 = sand.u32 1, %s1174_s27  }
  0x59   : > { %s250_s10 = ssub.s32 0, %s249_s9  ;;  %s279_s15 = ssub.s32 0, %s1671_s21 }
  0x5a   : > { %s1091_s14 = sadd.s32 %s1090_s12, %s1089_s29  ;;  %s2560_s10 = smov (!%p246_p1, %s250_s10), %s249_s9 }
  0x5b   : > { %s1177_s26 = sshll.u32 %s1091_s14, 4  ;;  %p1176_p13 = scmp.lt.s32.totalorder %s2560_s10, 0 }
  0x5c   : > { %s256_s1 = sadd.s32 2, %s2560_s10  ;;  %s1093_s30 = scalar_lea.hbm %s2497_s0, %s1177_s26 }
  0x5d   : > { %s1891_s24 = smin.u32 %s1671_s21, %s279_s15  ;;  %s2562_s1 = smov (!%p1176_p13, %s256_s1), %s2560_s10 }
  0x5e   : > { %p1399_p10 = scmp.lt.s32.totalorder %s1850_s16, 2  ;;  %s264_s3 = smul.u32 240, %s2562_s1 }
  0x5f   : > { %s281_s29 = sand.u32 1, %s1891_s24   ;;  %s1094_s27 = scalar_lea.hbm %s1093_s30, 3072 }
  0x60   : > { %s265_s12 = scalar_lea.vmem [#allocation2], %s264_s3  ;;  %s282_s14 = ssub.s32 0, %s281_s29 }
  0x61   : > { %s274_s9 = sshll.u32 %s265_s12, 4  ;;  %s266_s23 = scalar_lea.sflag [#allocation3], %s2562_s1  ;;  %s275_s9 = int_to_ptr.vmem [resolvable:$true] %s274_s9 }
  0x62   : > { %s1584_s28 = scalar_lea.hbm %s1093_s30, 6912  ;;  %p1563_p7 = scmp.lt.s32.totalorder %s1094_s27, %s2497_s0 }
  0x63   : > { %p1559_p4 = scmp.ne.s32.totalorder %s1094_s27, %s1584_s28  ;;  %s2529_s24 = scalar_lea.hbm %s2497_s0, 13824 }
  0x64   : > { %p1564_p9 = scmp.lt.s32.totalorder %s2529_s24, %s1584_s28 }
  0x65   : > { %p1560_p5 = pnand %p1559_p4, %p1399_p10 }
  0x66   : > { %p1565_p12 = por %p1564_p9, %p1563_p7 }
  0x67   : > { %p1561_p6 = pneg %p1560_p5 }
  0x69   : > { %p1566_p0 = pnand %p1565_p12, %p1561_p6 }
  0x6b   : > { %1569 = shalt.err (!%p1566_p0)  }
  0x6c   : > { %s1570_s3 = scalar_lea.vmem %s275_s9, 3840  ;;  %p1577_p4 = scmp.lt.s32.totalorder %s275_s9, %s1855_s6 }
  0x6d   : > { %p1571_p11 = scmp.ne.s32.totalorder %s275_s9, %s1570_s3  ;;  %s2530_s1 = scalar_lea.vmem %s1855_s6, 7680 }
  0x6e   : > { %p1578_p5 = scmp.lt.s32.totalorder %s2530_s1, %s1570_s3 }
  0x6f   : > { %p1572_p1 = pnand %p1571_p11, %p1399_p10 }
  0x70   : > { %p1579_p2 = por %p1578_p5, %p1577_p4 }
  0x71   : > { %p1573_p13 = pneg %p1572_p1 }
  0x73   : > { %p1580_p8 = pnand %p1579_p2, %p1573_p13 }
  0x75   : > { %1583 = shalt.err (!%p1580_p8)  }
  0x76   : > { %1380 = dma.hbm_to_vmem [thread:$0]  (%p1399_p10), %s1094_s27, 3840, %s275_s9, %s266_s23 }
  0x77   : > { %p2531_p6 = scmp.lt.s32.totalorder %s1671_s21, 0  ;;  %s1919_s12 = scalar_lea.vmem [#allocation9], %s1845_s11 }
  0x79   : > { %s2564_s14 = smov (!%p2531_p6, %s282_s14), %s281_s29 }
  0x7a   : > { %p1180_p7 = scmp.lt.s32.totalorder %s2564_s14, 0  ;;  %s288_s30 = sadd.s32 2, %s2564_s14 }
  0x7c   : > { %s2566_s30 = smov (!%p1180_p7, %s288_s30), %s2564_s14 }
  0x7d   : > { %s290_s28 = scalar_lea.sflag [#allocation3], %s2566_s30 }
  0x7e   : > { %1651 = dma.done.wait %s290_s28, 3840 }
  0x7f   : > { %1652 = vsyncadd %s290_s28, 4294963456  ;;  %v1472_v0 = vld [vmem:[#allocation7 + $0x38] sm:$0xff]   ;;  %v1473_v1 = vld [vmem:[#allocation7 + $0x30] sm:$0xff]   ;;  %s296_s6 = smul.u32 240, %s2566_s30  ;;  %s1297_s9 = sshll.u32 %s1671_s21, 4 }
  0x80   : > { %1321 = vmatprep.subr.bf16.mxu0 %v1472_v0  ;;  %1353 = vmatprep.subr.bf16.mxu1 %v1472_v0  ;;  %v1474_v2 = vld [vmem:[#allocation7 + $0x28] sm:$0xff]   ;;  %v1475_v3 = vld [vmem:[#allocation7 + $0x20] sm:$0xff]   ;;  %v1921_v4 = vld [vmem:[#allocation4] ss:$0 sm:$0xff]  ;;  %s1298_s14 = sshll.u32 %s1675_s22, 5  ;;  %s1043_s22 = sshll.u32 %s1919_s12, 4  ;;  %s2440_s22 = int_to_ptr.vmem [resolvable:$true] %s1043_s22 }
  0x81   : > { %1322 = vmatpush3.bf16.msra.mxu0 %v1472_v0  ;;  %1361 = vmatpush3.bf16.msra.mxu1 %v1472_v0  ;;  %s1923_s23 = scalar_lea.vmem [#allocation2], %s296_s6  ;;  %v1929_v9 = vld [vmem:[#allocation4 + $0x1] ss:$0 sm:$0xff]  ;;  %v1933_v12 = vld [vmem:[#allocation7 + $0x18] sm:$0xff]   ;;  %v1937_v15 = vld [vmem:[#allocation4 + $0x2] ss:$0 sm:$0xff]  ;;  %s1040_s17 = sadd.s32 %s1298_s14, %s1297_s9 }
  0x82   : > { %1323 = vmatprep.subr.bf16.mxu0 %v1473_v1  ;;  %1354 = vmatprep.subr.bf16.mxu1 %v1473_v1  ;;  %v298_v5 = vld [vmem:[%s1923_s23] sm:$0xff]  ;;  %v299_v6 = vld [vmem:[%s1923_s23 + $0x8] sm:$0xff]  ;;  %v1184_v21 = vld [vmem:[%s1923_s23 + $0x18] sm:$0xff]  ;;  %s1299_s21 = sshll.u32 %s1040_s17, 7  ;;  %s2544_s24 = sand.u32 1, %s1663_s19  }
  0x83   : > { %v318_v7 = vmul.f32 %v1921_v4, %v298_v5  ;;  %v319_v8 = vmul.f32 %v1921_v4, %v299_v6  ;;  %v351_v10 = vld [vmem:[%s1923_s23 + $0x1] sm:$0xff]  ;;  %v352_v11 = vld [vmem:[%s1923_s23 + $0x9] sm:$0xff]  ;;  %v1201_v27 = vld [vmem:[%s1923_s23 + $0x19] sm:$0xff]  ;;  %v1967_v35 = vmul.f32 %v1184_v21, %v1921_v4  ;;  %s2438_s15 = scalar_lea.hbm %s2502_s5, %s1299_s21  ;;  %s2446_s3 = scalar_lea.sflag [#allocation6], %s2544_s24 }
  0x84   : > { %v371_v13 = vmul.f32 %v1929_v9, %v351_v10  ;;  %v372_v14 = vmul.f32 %v1929_v9, %v352_v11  ;;  %v404_v16 = vld [vmem:[%s1923_s23 + $0x2] sm:$0xff]  ;;  %v405_v17 = vld [vmem:[%s1923_s23 + $0xa] sm:$0xff]  ;;  %v1961_v33 = vld [vmem:[%s1923_s23 + $0x1a] sm:$0xff]  ;;  %v2021_v61 = vmul.f32 %v1201_v27, %v1929_v9  ;;  %s1585_s1 = scalar_lea.vmem %s2440_s22, 2048  ;;  %s1694_s30 = smov [#allocation9]  }
  0x85   : > { %1324 = vmatpush3.bf16.msra.mxu0 %v1473_v1  ;;  %1362 = vmatpush3.bf16.msra.mxu1 %v1473_v1  ;;  %v424_v18 = vmul.f32 %v1937_v15, %v404_v16  ;;  %v425_v19 = vmul.f32 %v1937_v15, %v405_v17  ;;  %v1943_v20 = vld [vmem:[#allocation4 + $0x4] ss:$0 sm:$0xff]  ;;  %v1948_v26 = vld [vmem:[#allocation4 + $0x5] ss:$0 sm:$0xff]  ;;  %v1958_v32 = vld [vmem:[#allocation4 + $0x6] ss:$0 sm:$0xff]  ;;  %p1586_p8 = scmp.ne.s32.totalorder %s2440_s22, %s1585_s1 }
  0x86   : > { %1325 = vmatprep.subr.bf16.mxu0 %v1474_v2  ;;  %1355 = vmatprep.subr.bf16.mxu1 %v1474_v2  ;;  %v1185_v22 = vld [vmem:[%s1923_s23 + $0x20] sm:$0xff]  ;;  %v387_v23 = vadd.f32 %v371_v13, %v318_v7  ;;  %v388_v24 = vadd.f32 %v372_v14, %v319_v8  ;;  %v480_v25 = vmul.f32 %v1943_v20, %v1184_v21  ;;  %v1973_v41 = vld [vmem:[#allocation4 + $0x8] ss:$0 sm:$0xff]  ;;  %v1976_v42 = vld [vmem:[%s1923_s23 + $0x30] sm:$0xff]  ;;  %s1589_s28 = sshll.u32 %s1694_s30, 4  ;;  %s1590_s28 = int_to_ptr.vmem [resolvable:$false] %s1589_s28 }
  0x87   : > { %v1952_v28 = vld [vmem:[%s1923_s23 + $0x21] sm:$0xff]  ;;  %v481_v29 = vmul.f32 %v1943_v20, %v1185_v22  ;;  %v533_v30 = vmul.f32 %v1948_v26, %v1201_v27  ;;  %v586_v39 = vmul.f32 %v1958_v32, %v1961_v33  ;;  %v1979_v43 = vld [vmem:[%s1923_s23 + $0x38] sm:$0xff]  ;;  %v642_v44 = vmul.f32 %v1973_v41, %v1976_v42  ;;  %v2043_v8 = vld [vmem:[%s1923_s23 + $0x6a] sm:$0xff]  ;;  %p1587_p10 = pnand %p1586_p8, %p1779_p3  ;;  %s1591_s6 = scalar_lea.vmem %s1590_s28, 4096 }
  0x88   : > { %v534_v31 = vmul.f32 %v1948_v26, %v1952_v28  ;;  %v1964_v34 = vld [vmem:[%s1923_s23 + $0x22] sm:$0xff]  ;;  %v440_v37 = vadd.f32 %v424_v18, %v387_v23  ;;  %v441_v38 = vadd.f32 %v425_v19, %v388_v24  ;;  %v643_v45 = vmul.f32 %v1973_v41, %v1979_v43  ;;  %v1988_v47 = vld [vmem:[%s1923_s23 + $0x31] sm:$0xff]  ;;  %v1991_v48 = vld [vmem:[%s1923_s23 + $0x39] sm:$0xff]  ;;  %p1592_p9 = scmp.lt.s32.totalorder %s2440_s22, %s1590_s28  ;;  %p1593_p12 = scmp.lt.s32.totalorder %s1591_s6, %s1585_s1 }
  0x89   : > { %1326 = vmatpush3.bf16.msra.mxu0 %v1474_v2  ;;  %1363 = vmatpush3.bf16.msra.mxu1 %v1474_v2  ;;  %v1477_v36 = vld [vmem:[#allocation7 + $0x10] sm:$0xff]   ;;  %v587_v40 = vmul.f32 %v1958_v32, %v1964_v34  ;;  %v1985_v46 = vld [vmem:[#allocation4 + $0x9] ss:$0 sm:$0xff]  ;;  %v1994_v49 = vmul.f32 %v1185_v22, %v1921_v4  ;;  %v2000_v53 = vld [vmem:[#allocation4 + $0xa] ss:$0 sm:$0xff]  ;;  %p1588_p2 = pneg %p1587_p10 }
  0x8a   : > { %1327 = vmatprep.subr.bf16.mxu0 %v1475_v3  ;;  %1356 = vmatprep.subr.bf16.mxu1 %v1475_v3  ;;  %v496_v50 = vadd.f32 %v480_v25, %v440_v37  ;;  %v497_v51 = vadd.f32 %v481_v29, %v441_v38  ;;  %v695_v52 = vmul.f32 %v1985_v46, %v1988_v47  ;;  %v2003_v54 = vld [vmem:[%s1923_s23 + $0x32] sm:$0xff]  ;;  %v2006_v55 = vld [vmem:[%s1923_s23 + $0x3a] sm:$0xff]  ;;  %v2018_v60 = vld [vmem:[%s1923_s23 + $0x68] sm:$0xff]  ;;  %p1594_p0 = por %p1593_p12, %p1592_p9 }
  0x8b   : > { %v696_v56 = vmul.f32 %v1985_v46, %v1991_v48  ;;  %v748_v57 = vmul.f32 %v2000_v53, %v2003_v54  ;;  %v749_v58 = vmul.f32 %v2000_v53, %v2006_v55  ;;  %v2015_v59 = vld [vmem:[%s1923_s23 + $0x60] sm:$0xff]  ;;  %v327_v1 = vmul.f32 %v1921_v4, %v2018_v60  ;;  %v2050_v16 = vld [vmem:[%s1923_s23 + $0x78] sm:$0xff] }
  0x8c   : > { %v549_v62 = vadd.f32 %v533_v30, %v496_v50  ;;  %v550_v63 = vadd.f32 %v534_v31, %v497_v51  ;;  %v326_v0 = vmul.f32 %v1921_v4, %v2015_v59  ;;  %v2028_v2 = vld [vmem:[%s1923_s23 + $0x61] sm:$0xff]  ;;  %2532 = vst [vmem:[#allocation24_spill] sm:$0xff] %v2050_v16  ;;  %v488_v21 = vmul.f32 %v1943_v20, %v2050_v16  ;;  %v2060_v23 = vld [vmem:[%s1923_s23 + $0x79] sm:$0xff]  ;;  %p1595_p11 = pnand %p1594_p0, %p1588_p2 }
  0x8d   : > { %1328 = vmatpush3.bf16.msra.mxu0 %v1475_v3  ;;  %1364 = vmatpush3.bf16.msra.mxu1 %v1475_v3  ;;  %v2031_v3 = vld [vmem:[%s1923_s23 + $0x69] sm:$0xff]  ;;  %v379_v6 = vmul.f32 %v1929_v9, %v2028_v2  ;;  %v2053_v17 = vld [vmem:[%s1923_s23 + $0x80] sm:$0xff]  ;;  %2534 = vst [vmem:[#allocation26_spill] sm:$0xff] %v2060_v23  ;;  %v541_v29 = vmul.f32 %v1948_v26, %v2060_v23 }
  0x8e   : > { %1329 = vmatprep.subr.bf16.mxu0 %v1933_v12  ;;  %1357 = vmatprep.subr.bf16.mxu1 %v1933_v12  ;;  %v2034_v5 = vld [vmem:[%s1923_s23 + $0x62] sm:$0xff]  ;;  %v380_v7 = vmul.f32 %v1929_v9, %v2031_v3  ;;  %v602_v13 = vadd.f32 %v586_v39, %v549_v62  ;;  %v603_v14 = vadd.f32 %v587_v40, %v550_v63  ;;  %v2070_v31 = vld [vmem:[%s1923_s23 + $0x7a] sm:$0xff]  ;;  %v2080_v62 = vld [vmem:[%s1923_s23 + $0x90] sm:$0xff] }
  0x8f   : > { %v432_v10 = vmul.f32 %v1937_v15, %v2034_v5  ;;  %v1478_v11 = vld [vmem:[#allocation7 + $0x8] sm:$0xff]   ;;  %2533 = vst [vmem:[#allocation25_spill] sm:$0xff] %v2053_v17  ;;  %v395_v18 = vadd.f32 %v379_v6, %v326_v0  ;;  %v489_v22 = vmul.f32 %v1943_v20, %v2053_v17  ;;  %2536 = vst [vmem:[#allocation28_spill] sm:$0xff] %v2070_v31  ;;  %v2088_v63 = vld [vmem:[%s2499_s2] ss:$0 sm:$0xff] }
  0x90   : > { %v396_v19 = vadd.f32 %v380_v7, %v327_v1  ;;  %v2063_v24 = vld [vmem:[%s1923_s23 + $0x81] sm:$0xff]  ;;  %v658_v25 = vadd.f32 %v642_v44, %v602_v13  ;;  %v659_v27 = vadd.f32 %v643_v45, %v603_v14  ;;  %v594_v40 = vmul.f32 %v1958_v32, %v2070_v31  ;;  %v2095_v6 = vld [vmem:[%s1923_s23 + $0x91] sm:$0xff]  ;;  %v2098_v7 = vld [vmem:[%s1923_s23 + $0x99] sm:$0xff] }
  0x91   : > { %1330 = vmatpush3.bf16.msra.mxu0 %v1933_v12  ;;  %1365 = vmatpush3.bf16.msra.mxu1 %v1933_v12  ;;  %v433_v12 = vmul.f32 %v1937_v15, %v2043_v8  ;;  %2535 = vst [vmem:[#allocation27_spill] sm:$0xff] %v2063_v24  ;;  %v542_v30 = vmul.f32 %v1948_v26, %v2063_v24  ;;  %v2073_v39 = vld [vmem:[%s1923_s23 + $0x82] sm:$0xff] }
  0x92   : > { %1331 = vmatprep.subr.bf16.mxu0 %v1477_v36  ;;  %1358 = vmatprep.subr.bf16.mxu1 %v1477_v36  ;;  %v448_v37 = vadd.f32 %v432_v10, %v395_v18  ;;  %2537 = vst [vmem:[#allocation29_spill] sm:$0xff] %v2073_v39  ;;  %v1479_v44 = vld [vmem:[#allocation7] sm:$0xff]   ;;  %v711_v45 = vadd.f32 %v695_v52, %v658_v25 }
  0x93   : > { %v449_v38 = vadd.f32 %v433_v12, %v396_v19  ;;  %v712_v50 = vadd.f32 %v696_v56, %v659_v27  ;;  %v595_v51 = vmul.f32 %v1958_v32, %v2073_v39  ;;  %v650_v52 = vmul.f32 %v1973_v41, %v2080_v62  ;;  %v2105_v18 = vld [vmem:[%s1923_s23 + $0x92] sm:$0xff] }
  0x94   : > { %v504_v0 = vadd.f32 %v488_v21, %v448_v37  ;;  %v764_v10 = vadd.f32 %v748_v57, %v711_v45  ;;  %v703_v14 = vmul.f32 %v1985_v46, %v2095_v6  ;;  %v704_v12 = vmul.f32 %v1985_v46, %v2098_v7 }
  0x95   : > { %1332 = vmatpush3.bf16.msra.mxu0 %v1477_v36  ;;  %1366 = vmatpush3.bf16.msra.mxu1 %v1477_v36  ;;  %v2083_v36 = vld [vmem:[%s1923_s23 + $0x98] sm:$0xff]  ;;  %v505_v1 = vadd.f32 %v489_v22, %v449_v38  ;;  %v765_v13 = vadd.f32 %v749_v58, %v712_v50  ;;  %v756_v25 = vmul.f32 %v2000_v53, %v2105_v18 }
  0x96   : > { %1333 = vmatprep.subr.bf16.mxu0 %v1478_v11  ;;  %1359 = vmatprep.subr.bf16.mxu1 %v1478_v11  ;;  %v651_v56 = vmul.f32 %v1973_v41, %v2083_v36  ;;  %v557_v19 = vadd.f32 %v541_v29, %v504_v0  ;;  %v2108_v22 = vld [vmem:[%s1923_s23 + $0x9a] sm:$0xff]  ;;  %v787_v57 = vadd.f32 %v2088_v63, %v764_v10 }
  0x97   : > { %v558_v21 = vadd.f32 %v542_v30, %v505_v1  ;;  %v788_v58 = vadd.f32 %v2088_v63, %v765_v13  ;;  %v757_v27 = vmul.f32 %v2000_v53, %v2108_v22  ;;  %v389_v29 = vadd.f32 %v2021_v61, %v1967_v35 }
  0x98   : > { %v610_v37 = vadd.f32 %v594_v40, %v557_v19  ;;  %v803_v30 = vmax.f32 %v787_v57, 0.0  ;;  %v426_v50 = vmul.f32 %v1961_v33, %v1937_v15  ;;  %v427_v0 = vmul.f32 %v1964_v34, %v1937_v15 }
  0x99   : > { %1334 = vmatpush3.bf16.msra.mxu0 %v1478_v11  ;;  %1367 = vmatpush3.bf16.msra.mxu1 %v1478_v11  ;;  %v611_v38 = vadd.f32 %v595_v51, %v558_v21  ;;  %v374_v11 = vmul.f32 %v1952_v28, %v1929_v9  ;;  %v804_v45 = vmax.f32 %v788_v58, 0.0  ;;  %v482_v35 = vmul.f32 %v1976_v42, %v1943_v20  ;;  %v2138_v21 = vld [vmem:[%s1923_s23 + $0x48] sm:$0xff]  ;;  %v2141_v58 = vld [vmem:[%s1923_s23 + $0x50] sm:$0xff] }
  0x9a   : > { %1335 = vmatprep.subr.bf16.mxu0 %v1479_v44  ;;  %1360 = vmatprep.subr.bf16.mxu1 %v1479_v44  ;;  %v666_v1 = vadd.f32 %v650_v52, %v610_v37  ;;  %v442_v28 = vadd.f32 %v426_v50, %v389_v29  ;;  %v483_v61 = vmul.f32 %v1979_v43, %v1943_v20 }
  0x9b   : > { %v667_v40 = vadd.f32 %v651_v56, %v611_v38  ;;  %v390_v51 = vadd.f32 %v374_v11, %v1994_v49  ;;  %v819_v10 = vpack.c.bf16 %v804_v45, %v803_v30  ;;  %v536_v49 = vmul.f32 %v1991_v48, %v1948_v26  ;;  %v2146_v38 = vld [vmem:[%s1923_s23 + $0x49] sm:$0xff]  ;;  %v2149_v11 = vld [vmem:[%s1923_s23 + $0x51] sm:$0xff] }
  0x9c   : > { %v719_v33 = vadd.f32 %v703_v14, %v666_v1  ;;  %v498_v52 = vadd.f32 %v482_v35, %v442_v28  ;;  %v588_v56 = vmul.f32 %v2003_v54, %v1958_v32  ;;  %v589_v19 = vmul.f32 %v2006_v55, %v1958_v32 }
  0x9d   : > { %1336 = vmatpush3.bf16.msra.mxu0 %v1479_v44  ;;  %1368 = vmatpush3.bf16.msra.mxu1 %v1479_v44  ;;  %v720_v34 = vadd.f32 %v704_v12, %v667_v40  ;;  %v443_v13 = vadd.f32 %v427_v0, %v390_v51  ;;  %v535_v44 = vmul.f32 %v1988_v47, %v1948_v26  ;;  %v2163_v40 = vld [vmem:[%s1923_s23 + $0x52] sm:$0xff] }
  0x9e   : > { %1337 = vmatprep.mubr.bf16.mxu0 %v819_v10  ;;  %v772_v14 = vadd.f32 %v756_v25, %v719_v33  ;;  %v644_v37 = vmul.f32 %v1973_v41, %v2138_v21  ;;  %v645_v30 = vmul.f32 %v1973_v41, %v2141_v58  ;;  %v697_v45 = vmul.f32 %v1985_v46, %v2146_v38 }
  0x9f   : > { %v773_v12 = vadd.f32 %v757_v27, %v720_v34  ;;  %v499_v57 = vadd.f32 %v483_v61, %v443_v13  ;;  %v551_v29 = vadd.f32 %v535_v44, %v498_v52  ;;  %v698_v25 = vmul.f32 %v1985_v46, %v2149_v11  ;;  %v2158_v27 = vld [vmem:[%s1923_s23 + $0x4a] sm:$0xff] }
  0xa0   : > { %v795_v50 = vadd.f32 %v2088_v63, %v772_v14  ;;  %v750_v51 = vmul.f32 %v2000_v53, %v2158_v27  ;;  %v751_v28 = vmul.f32 %v2000_v53, %v2163_v40  ;;  %v328_v35 = vmul.f32 %v2050_v16, %v1921_v4 }
  0xa1   : > { %v796_v0 = vadd.f32 %v2088_v63, %v773_v12  ;;  %v552_v1 = vadd.f32 %v536_v49, %v499_v57  ;;  %v604_v10 = vadd.f32 %v588_v56, %v551_v29  ;;  %v329_v61 = vmul.f32 %v2053_v17, %v1921_v4 }
  0xa2   : > { %v811_v33 = vmax.f32 %v795_v50, 0.0  ;;  %v381_v44 = vmul.f32 %v2060_v23, %v1929_v9  ;;  %v382_v49 = vmul.f32 %v2063_v24, %v1929_v9  ;;  %v434_v56 = vmul.f32 %v2070_v31, %v1937_v15 }
  0xa3   : > { %v812_v34 = vmax.f32 %v796_v0, 0.0  ;;  %v605_v13 = vadd.f32 %v589_v19, %v552_v1  ;;  %v660_v52 = vadd.f32 %v644_v37, %v604_v10  ;;  %v435_v14 = vmul.f32 %v2073_v39, %v1937_v15  ;;  %v2218_v39 = vld [vmem:[%s1923_s23 + $0xb2] sm:$0xff] }
  0xa4   : > { %v397_v29 = vadd.f32 %v381_v44, %v328_v35  ;;  %v490_v19 = vmul.f32 %v2080_v62, %v1943_v20  ;;  %v398_v37 = vadd.f32 %v382_v49, %v329_v61  ;;  %v491_v0 = vmul.f32 %v2083_v36, %v1943_v20  ;;  %v2197_v44 = vld [vmem:[%s1923_s23 + $0xb0] sm:$0xff] }
  0xa5   : > { %v823_v12 = vpack.c.bf16 %v812_v34, %v811_v33  ;;  %v661_v57 = vadd.f32 %v645_v30, %v605_v13  ;;  %v713_v50 = vadd.f32 %v697_v45, %v660_v52  ;;  %v543_v1 = vmul.f32 %v2095_v6, %v1948_v26  ;;  %v2192_v34 = vld [vmem:[%s1923_s23 + $0xa8] sm:$0xff] }
  0xa6   : > { %v450_v33 = vadd.f32 %v434_v56, %v397_v29  ;;  %v544_v30 = vmul.f32 %v2098_v7, %v1948_v26  ;;  %v596_v35 = vmul.f32 %v2105_v18, %v1958_v32  ;;  %v451_v61 = vadd.f32 %v435_v14, %v398_v37  ;;  %v2202_v52 = vld [vmem:[%s1923_s23 + $0xa9] sm:$0xff] }
  0xa7   : > { %1345 = vmatprep.mubr.bf16.mxu1 %v823_v12  ;;  %v714_v10 = vadd.f32 %v698_v25, %v661_v57  ;;  %v766_v45 = vadd.f32 %v750_v51, %v713_v50  ;;  %v597_v13 = vmul.f32 %v2108_v22, %v1958_v32  ;;  %v652_v25 = vmul.f32 %v1973_v41, %v2192_v34  ;;  %v2207_v57 = vld [vmem:[%s1923_s23 + $0xb1] sm:$0xff] }
  0xa8   : > { %v506_v56 = vadd.f32 %v490_v19, %v450_v33  ;;  %v653_v12 = vmul.f32 %v1973_v41, %v2197_v44  ;;  %v705_v51 = vmul.f32 %v1985_v46, %v2202_v52  ;;  %v2212_v14 = vld [vmem:[%s1923_s23 + $0xaa] sm:$0xff]  ;;  %v507_v50 = vadd.f32 %v491_v0, %v451_v61 }
  0xa9   : > { %v767_v49 = vadd.f32 %v751_v28, %v714_v10  ;;  %v789_v29 = vadd.f32 %v2088_v63, %v766_v45  ;;  %v706_v37 = vmul.f32 %v1985_v46, %v2207_v57  ;;  %v758_v28 = vmul.f32 %v2000_v53, %v2212_v14 }
  0xaa   : > { %v559_v10 = vadd.f32 %v543_v1, %v506_v56  ;;  %v759_v33 = vmul.f32 %v2000_v53, %v2218_v39  ;;  %v322_v31 = vmul.f32 %v1976_v42, %v1921_v4  ;;  %v560_v45 = vadd.f32 %v544_v30, %v507_v50 }
  0xab   : > { %v790_v19 = vadd.f32 %v2088_v63, %v767_v49  ;;  %v805_v24 = vmax.f32 %v789_v29, 0.0  ;;  %v323_v0 = vmul.f32 %v1979_v43, %v1921_v4  ;;  %v375_v61 = vmul.f32 %v1988_v47, %v1929_v9 }
  0xac   : > { %v612_v17 = vadd.f32 %v596_v35, %v559_v10  ;;  %v376_v49 = vmul.f32 %v1991_v48, %v1929_v9  ;;  %v428_v1 = vmul.f32 %v2003_v54, %v1937_v15  ;;  %v613_v56 = vadd.f32 %v597_v13, %v560_v45 }
  0xad   : > { %v806_v23 = vmax.f32 %v790_v19, 0.0  ;;  %v391_v16 = vadd.f32 %v375_v61, %v322_v31  ;;  %v429_v42 = vmul.f32 %v2006_v55, %v1937_v15  ;;  %v484_v30 = vmul.f32 %v2138_v21, %v1943_v20 }
  0xae   : > { %v668_v29 = vadd.f32 %v652_v25, %v612_v17  ;;  %v392_v50 = vadd.f32 %v376_v49, %v323_v0  ;;  %v485_v47 = vmul.f32 %v2141_v58, %v1943_v20  ;;  %v669_v35 = vadd.f32 %v653_v12, %v613_v56 }
  0xaf   : > { %v820_v43 = vpack.c.bf16 %v806_v23, %v805_v24  ;;  %v444_v19 = vadd.f32 %v428_v1, %v391_v16  ;;  %v537_v48 = vmul.f32 %v2146_v38, %v1948_v26  ;;  %v538_v54 = vmul.f32 %v2149_v11, %v1948_v26 }
  0xb0   : > { %v721_v31 = vadd.f32 %v705_v51, %v668_v29  ;;  %v445_v55 = vadd.f32 %v429_v42, %v392_v50  ;;  %v590_v13 = vmul.f32 %v2158_v27, %v1958_v32  ;;  %v591_v17 = vmul.f32 %v2163_v40, %v1958_v32 }
  0xb1   : > { %1338 = vmatmul.mubr.bf16.vlgmr.msra.gmra.mxu0 %v820_v43  ;;  %v722_v23 = vadd.f32 %v706_v37, %v669_v35  ;;  %v500_v24 = vadd.f32 %v484_v30, %v444_v19  ;;  %v646_v16 = vmul.f32 %v1973_v41, %v2015_v59  ;;  %v647_v25 = vmul.f32 %v1973_v41, %v2018_v60 }
  0xb2   : > { %v774_v12 = vadd.f32 %v758_v28, %v721_v31  ;;  %v501_v10 = vadd.f32 %v485_v47, %v445_v55  ;;  %v699_v51 = vmul.f32 %v1985_v46, %v2028_v2  ;;  %v700_v45 = vmul.f32 %v1985_v46, %v2031_v3 }
  0xb3   : > { %v775_v0 = vadd.f32 %v759_v33, %v722_v23  ;;  %v553_v61 = vadd.f32 %v537_v48, %v500_v24  ;;  %v752_v37 = vmul.f32 %v2000_v53, %v2034_v5  ;;  %v753_v49 = vmul.f32 %v2000_v53, %v2043_v8 }
  0xb4   : > { %v797_v1 = vadd.f32 %v2088_v63, %v774_v12  ;;  %v554_v56 = vadd.f32 %v538_v54, %v501_v10  ;;  %v330_v28 = vmul.f32 %v2080_v62, %v1921_v4  ;;  %v331_v42 = vmul.f32 %v2083_v36, %v1921_v4  ;;  %v2288_v12 = vld [vmem:[%s1923_s23 + $0xc0] sm:$0xff] }
  0xb5   : > { %v798_v30 = vadd.f32 %v2088_v63, %v775_v0  ;;  %v606_v43 = vadd.f32 %v590_v13, %v553_v61  ;;  %v383_v33 = vmul.f32 %v2095_v6, %v1929_v9  ;;  %v384_v29 = vmul.f32 %v2098_v7, %v1929_v9  ;;  %v2291_v61 = vld [vmem:[%s1923_s23 + $0xc8] sm:$0xff] }
  0xb6   : > { %v813_v50 = vmax.f32 %v797_v1, 0.0  ;;  %v607_v47 = vadd.f32 %v591_v17, %v554_v56  ;;  %v436_v35 = vmul.f32 %v2105_v18, %v1937_v15  ;;  %v437_v62 = vmul.f32 %v2108_v22, %v1937_v15  ;;  %v2296_v1 = vld [vmem:[%s1923_s23 + $0xc1] sm:$0xff]  ;;  %v2299_v56 = vld [vmem:[%s1923_s23 + $0xc9] sm:$0xff] }
  0xb7   : > { %v814_v19 = vmax.f32 %v798_v30, 0.0  ;;  %v662_v36 = vadd.f32 %v646_v16, %v606_v43  ;;  %v399_v48 = vadd.f32 %v383_v33, %v330_v28  ;;  %v400_v54 = vadd.f32 %v384_v29, %v331_v42  ;;  %v2308_v43 = vld [vmem:[%s1923_s23 + $0xc2] sm:$0xff] }
  0xb8   : > { %v663_v31 = vadd.f32 %v647_v25, %v607_v47  ;;  %v492_v6 = vmul.f32 %v2192_v34, %v1943_v20  ;;  %v493_v7 = vmul.f32 %v2197_v44, %v1943_v20  ;;  %v545_v55 = vmul.f32 %v2202_v52, %v1948_v26  ;;  %v2312_v47 = vld [vmem:[%s1923_s23 + $0xca] sm:$0xff] }
  0xb9   : > { %v824_v18 = vpack.c.bf16 %v814_v19, %v813_v50  ;;  %v715_v22 = vadd.f32 %v699_v51, %v662_v36  ;;  %v452_v13 = vadd.f32 %v436_v35, %v399_v48  ;;  %v453_v17 = vadd.f32 %v437_v62, %v400_v54 }
  0xba   : > { %v716_v23 = vadd.f32 %v700_v45, %v663_v31  ;;  %v546_v24 = vmul.f32 %v2207_v57, %v1948_v26  ;;  %v598_v16 = vmul.f32 %v2212_v14, %v1958_v32  ;;  %v599_v25 = vmul.f32 %v2218_v39, %v1958_v32 }
  0xbb   : > { %1346 = vmatmul.mubr.bf16.vlgmr.msra.gmra.mxu1 %v824_v18  ;;  %v768_v10 = vadd.f32 %v752_v37, %v715_v22  ;;  %v508_v0 = vadd.f32 %v492_v6, %v452_v13  ;;  %v509_v51 = vadd.f32 %v493_v7, %v453_v17  ;;  %v654_v45 = vmul.f32 %v1973_v41, %v2288_v12 }
  0xbc   : > { %v769_v28 = vadd.f32 %v753_v49, %v716_v23  ;;  %v655_v42 = vmul.f32 %v1973_v41, %v2291_v61  ;;  %v707_v30 = vmul.f32 %v1985_v46, %v2296_v1  ;;  %v708_v37 = vmul.f32 %v1985_v46, %v2299_v56 }
  0xbd   : > { %v791_v33 = vadd.f32 %v2088_v63, %v768_v10  ;;  %v561_v29 = vadd.f32 %v545_v55, %v508_v0  ;;  %v562_v50 = vadd.f32 %v546_v24, %v509_v51  ;;  %v760_v49 = vmul.f32 %v2000_v53, %v2308_v43  ;;  %v2538_v51 = vld [vmem:[#allocation24_spill] sm:$0xff] }
  0xbe   : > { %v792_v35 = vadd.f32 %v2088_v63, %v769_v28  ;;  %v761_v62 = vmul.f32 %v2000_v53, %v2312_v47  ;;  %v324_v19 = vmul.f32 %v2138_v21, %v1921_v4  ;;  %v325_v36 = vmul.f32 %v2141_v58, %v1921_v4 }
  0xbf   : > { %v807_v48 = vmax.f32 %v791_v33, 0.0  ;;  %v614_v54 = vadd.f32 %v598_v16, %v561_v29  ;;  %v615_v31 = vadd.f32 %v599_v25, %v562_v50  ;;  %v377_v6 = vmul.f32 %v2146_v38, %v1929_v9  ;;  %v2540_v33 = vld [vmem:[#allocation26_spill] sm:$0xff]  ;;  %v2541_v29 = vld [vmem:[#allocation27_spill] sm:$0xff] }
  0xc0   : > { %v808_v7 = vmax.f32 %v792_v35, 0.0  ;;  %v378_v55 = vmul.f32 %v2149_v11, %v1929_v9  ;;  %v430_v18 = vmul.f32 %v2158_v27, %v1937_v15  ;;  %v431_v22 = vmul.f32 %v2163_v40, %v1937_v15 }
  0xc1   : > { %v670_v21 = vadd.f32 %v654_v45, %v614_v54  ;;  %v671_v13 = vadd.f32 %v655_v42, %v615_v31  ;;  %v393_v17 = vadd.f32 %v377_v6, %v324_v19  ;;  %v486_v58 = vmul.f32 %v1943_v20, %v2015_v59  ;;  %v2539_v42 = vld [vmem:[#allocation25_spill] sm:$0xff] }
  0xc2   : > { %v821_v23 = vpack.c.bf16 %v808_v7, %v807_v48  ;;  %v394_v24 = vadd.f32 %v378_v55, %v325_v36  ;;  %v487_v38 = vmul.f32 %v1943_v20, %v2018_v60  ;;  %v539_v11 = vmul.f32 %v1948_v26, %v2028_v2 }
  0xc3   : > { %v723_v16 = vadd.f32 %v707_v30, %v670_v21  ;;  %v724_v25 = vadd.f32 %v708_v37, %v671_v13  ;;  %v446_v27 = vadd.f32 %v430_v18, %v393_v17  ;;  %v540_v40 = vmul.f32 %v1948_v26, %v2031_v3 }
  0xc4   : > { %1341 = vmatprep.mubr.bf16.mxu0 %v821_v23  ;;  %v447_v10 = vadd.f32 %v431_v22, %v394_v24  ;;  %v592_v0 = vmul.f32 %v1958_v32, %v2034_v5  ;;  %v593_v59 = vmul.f32 %v1958_v32, %v2043_v8  ;;  %v648_v60 = vmul.f32 %v1973_v41, %v2538_v51  ;;  %v2542_v5 = vld [vmem:[#allocation28_spill] sm:$0xff] }
  0xc5   : > { %v776_v45 = vadd.f32 %v760_v49, %v723_v16  ;;  %v777_v28 = vadd.f32 %v761_v62, %v724_v25  ;;  %v502_v2 = vadd.f32 %v486_v58, %v446_v27  ;;  %v649_v30 = vmul.f32 %v1973_v41, %v2539_v42  ;;  %v2543_v62 = vld [vmem:[#allocation29_spill] sm:$0xff] }
  0xc6   : > { %v503_v37 = vadd.f32 %v487_v38, %v447_v10  ;;  %v701_v3 = vmul.f32 %v1985_v46, %v2540_v33  ;;  %v702_v50 = vmul.f32 %v1985_v46, %v2541_v29  ;;  %v754_v35 = vmul.f32 %v2000_v53, %v2542_v5  ;;  %v1249_v38 = vld [vmem:[%s1923_s23 + $0xd8] sm:$0xff]  ;;  %v1250_v25 = vld [vmem:[%s1923_s23 + $0xe0] sm:$0xff] }
  0xc7   : > { %v799_v8 = vadd.f32 %v2088_v63, %v776_v45  ;;  %v800_v19 = vadd.f32 %v2088_v63, %v777_v28  ;;  %v555_v49 = vadd.f32 %v539_v11, %v502_v2  ;;  %v755_v36 = vmul.f32 %v2000_v53, %v2543_v62  ;;  %v1266_v27 = vld [vmem:[%s1923_s23 + $0xd9] sm:$0xff]  ;;  %v1284_v2 = vld [vmem:[%s1923_s23 + $0xe2] sm:$0xff] }
  0xc8   : > { %v556_v48 = vadd.f32 %v540_v40, %v503_v37  ;;  %v332_v54 = vmul.f32 %v2192_v34, %v1921_v4  ;;  %v333_v31 = vmul.f32 %v2197_v44, %v1921_v4  ;;  %v385_v6 = vmul.f32 %v2202_v52, %v1929_v9 }
  0xc9   : > { %v815_v7 = vmax.f32 %v799_v8, 0.0  ;;  %v816_v55 = vmax.f32 %v800_v19, 0.0  ;;  %v608_v18 = vadd.f32 %v592_v0, %v555_v49  ;;  %v386_v22 = vmul.f32 %v2207_v57, %v1929_v9 }
  0xca   : > { %v609_v21 = vadd.f32 %v593_v59, %v556_v48  ;;  %v401_v13 = vadd.f32 %v385_v6, %v332_v54  ;;  %v438_v17 = vmul.f32 %v2212_v14, %v1937_v15  ;;  %v439_v34 = vmul.f32 %v2218_v39, %v1937_v15 }
  0xcb   : > { %v825_v58 = vpack.c.bf16 %v816_v55, %v815_v7  ;;  %v664_v4 = vadd.f32 %v648_v60, %v608_v18  ;;  %v402_v44 = vadd.f32 %v386_v22, %v333_v31  ;;  %v494_v52 = vmul.f32 %v2288_v12, %v1943_v20  ;;  %v1283_v60 = vld [vmem:[%s1923_s23 + $0xda] sm:$0xff] }
  0xcc   : > { %v665_v23 = vadd.f32 %v649_v30, %v609_v21  ;;  %v454_v24 = vadd.f32 %v438_v17, %v401_v13  ;;  %v495_v9 = vmul.f32 %v2291_v61, %v1943_v20  ;;  %v547_v57 = vmul.f32 %v2296_v1, %v1948_v26 }
  0xcd   : > { %1349 = vmatprep.mubr.bf16.mxu1 %v825_v58  ;;  %v717_v14 = vadd.f32 %v701_v3, %v664_v4  ;;  %v455_v15 = vadd.f32 %v439_v34, %v402_v44  ;;  %v548_v39 = vmul.f32 %v2299_v56, %v1948_v26  ;;  %v600_v16 = vmul.f32 %v2308_v43, %v1958_v32  ;;  %v1267_v26 = vld [vmem:[%s1923_s23 + $0xe1] sm:$0xff] }
  0xce   : > { %v718_v11 = vadd.f32 %v702_v50, %v665_v23  ;;  %v510_v12 = vadd.f32 %v494_v52, %v454_v24  ;;  %v601_v1 = vmul.f32 %v2312_v47, %v1958_v32  ;;  %v656_v0 = vmul.f32 %v1973_v41, %v1249_v38 }
  0xcf   : > { %v770_v20 = vadd.f32 %v754_v35, %v717_v14  ;;  %v511_v61 = vadd.f32 %v495_v9, %v455_v15  ;;  %v657_v51 = vmul.f32 %v1973_v41, %v1250_v25  ;;  %v709_v28 = vmul.f32 %v1985_v46, %v1266_v27 }
  0xd0   : > { %v771_v40 = vadd.f32 %v755_v36, %v718_v11  ;;  %v563_v10 = vadd.f32 %v547_v57, %v510_v12  ;;  %v710_v47 = vmul.f32 %v1985_v46, %v1267_v26  ;;  %v762_v33 = vmul.f32 %v2000_v53, %v1283_v60 }
  0xd1   : > { %v793_v56 = vadd.f32 %v2088_v63, %v770_v20  ;;  %v564_v59 = vadd.f32 %v548_v39, %v511_v61  ;;  %v763_v29 = vmul.f32 %v2000_v53, %v1284_v2  ;;  %v2400_v53 = vld [vmem:[%s2501_s4] ss:$0 sm:$0xff] }
  0xd2   : > { %v794_v43 = vadd.f32 %v2088_v63, %v771_v40  ;;  %v616_v45 = vadd.f32 %v600_v16, %v563_v10 }
  0xd3   : > { %v809_v42 = vmax.f32 %v793_v56, 0.0  ;;  %v617_v32 = vadd.f32 %v601_v1, %v564_v59 }
  0xd4   : > { %v810_v30 = vmax.f32 %v794_v43, 0.0  ;;  %v672_v37 = vadd.f32 %v656_v0, %v616_v45 }
  0xd5   : > { %v673_v3 = vadd.f32 %v657_v51, %v617_v32 }
  0xd6   : > { %v822_v50 = vpack.c.bf16 %v810_v30, %v809_v42  ;;  %v725_v41 = vadd.f32 %v709_v28, %v672_v37 }
  0xd7   : > { %v726_v5 = vadd.f32 %v710_v47, %v673_v3 }
  0xd8   : > { %1342 = vmatmul.mubr.bf16.gmra.mxu0 %v822_v50  ;;  %v778_v35 = vadd.f32 %v762_v33, %v725_v41 }
  0xd9   : > { %v779_v8 = vadd.f32 %v763_v29, %v726_v5 }
  0xda   : > { %v801_v19 = vadd.f32 %v2088_v63, %v778_v35 }
  0xdb   : > { %v802_v49 = vadd.f32 %v2088_v63, %v779_v8 }
  0xdc   : > { %v817_v46 = vmax.f32 %v801_v19, 0.0 }
  0xdd   : > { %v818_v62 = vmax.f32 %v802_v49, 0.0 }
  0xdf   : > { %v826_v36 = vpack.c.bf16 %v818_v62, %v817_v46 }
  0xe1   : > { %1350 = vmatmul.mubr.bf16.gmra.mxu1 %v826_v36 }
 0x171   : > { %v1339_v48 = vpop.f32.mrf.mxu0 }
 0x172   : > { %v941_v54 = vadd.f32 %v1339_v48, %v2400_v53 }
 0x173   : > { %v932_v31 = vpop.f32.mrf.mxu0 }
 0x174   : > { %v997_v6 = vmax.f32 %v941_v54, 0.0  ;;  %v933_v7 = vadd.f32 %v2400_v53, %v932_v31 }
 0x175   : > { %v1340_v63 = vpop.f32.mrf.mxu0 }
 0x176   : > { %1013 = vst [vmem:[%s1919_s12 + $0x10] sm:$0xff] %v997_v6  ;;  %v995_v55 = vmax.f32 %v933_v7, 0.0  ;;  %v944_v18 = vadd.f32 %v1340_v63, %v2400_v53 }
 0x177   : > { %v935_v22 = vpop.f32.mrf.mxu0 }
 0x178   : > { %1011 = vst [vmem:[%s1919_s12] sm:$0xff] %v995_v55  ;;  %v998_v21 = vmax.f32 %v944_v18, 0.0  ;;  %v936_v13 = vadd.f32 %v2400_v53, %v935_v22 }
 0x17a   : > { %1014 = vst [vmem:[%s1919_s12 + $0x18] sm:$0xff] %v998_v21  ;;  %v996_v17 = vmax.f32 %v936_v13, 0.0 }
 0x17b   : > { %v1347_v34 = vpop.f32.mrf.mxu1 }
 0x17c   : > { %1012 = vst [vmem:[%s1919_s12 + $0x8] sm:$0xff] %v996_v17  ;;  %v973_v58 = vadd.f32 %v1347_v34, %v2400_v53 }
 0x17d   : > { %v964_v4 = vpop.f32.mrf.mxu1 }
 0x17e   : > { %v1005_v44 = vmax.f32 %v973_v58, 0.0  ;;  %v965_v52 = vadd.f32 %v2400_v53, %v964_v4 }
 0x17f   : > { %v1348_v23 = vpop.f32.mrf.mxu1 }
 0x180   : > { %1021 = vst [vmem:[%s1919_s12 + $0x50] sm:$0xff] %v1005_v44  ;;  %v1003_v24 = vmax.f32 %v965_v52, 0.0  ;;  %v976_v9 = vadd.f32 %v1348_v23, %v2400_v53 }
 0x181   : > { %v967_v57 = vpop.f32.mrf.mxu1 }
 0x182   : > { %1019 = vst [vmem:[%s1919_s12 + $0x40] sm:$0xff] %v1003_v24  ;;  %v1006_v14 = vmax.f32 %v976_v9, 0.0  ;;  %v968_v15 = vadd.f32 %v2400_v53, %v967_v57 }
 0x184   : > { %1022 = vst [vmem:[%s1919_s12 + $0x58] sm:$0xff] %v1006_v14  ;;  %v1004_v39 = vmax.f32 %v968_v15, 0.0 }
 0x186   : > { %1020 = vst [vmem:[%s1919_s12 + $0x48] sm:$0xff] %v1004_v39 }
 0x198   : > { %v1343_v38 = vpop.f32.mrf.mxu0 }
 0x199   : > { %v957_v11 = vadd.f32 %v1343_v38, %v2400_v53 }
 0x19a   : > { %v948_v12 = vpop.f32.mrf.mxu0 }
 0x19b   : > { %v1001_v16 = vmax.f32 %v957_v11, 0.0  ;;  %v949_v25 = vadd.f32 %v2400_v53, %v948_v12 }
 0x19c   : > { %v1344_v20 = vpop.f32.mrf.mxu0 }
 0x19d   : > { %1017 = vst [vmem:[%s1919_s12 + $0x30] sm:$0xff] %v1001_v16  ;;  %v999_v61 = vmax.f32 %v949_v25, 0.0  ;;  %v960_v1 = vadd.f32 %v1344_v20, %v2400_v53 }
 0x19e   : > { %v951_v27 = vpop.f32.mrf.mxu0 }
 0x19f   : > { %1015 = vst [vmem:[%s1919_s12 + $0x20] sm:$0xff] %v999_v61  ;;  %v1002_v40 = vmax.f32 %v960_v1, 0.0  ;;  %v952_v10 = vadd.f32 %v2400_v53, %v951_v27 }
 0x1a1   : > { %v1351_v0 = vpop.f32.mrf.mxu1  ;;  %1018 = vst [vmem:[%s1919_s12 + $0x38] sm:$0xff] %v1002_v40  ;;  %v1000_v26 = vmax.f32 %v952_v10, 0.0 }
 0x1a2   : > { %v989_v56 = vadd.f32 %v1351_v0, %v2400_v53 }
 0x1a3   : > { %v980_v59 = vpop.f32.mrf.mxu1  ;;  %1016 = vst [vmem:[%s1919_s12 + $0x28] sm:$0xff] %v1000_v26 }
 0x1a4   : > { %v1009_v51 = vmax.f32 %v989_v56, 0.0  ;;  %v981_v60 = vadd.f32 %v2400_v53, %v980_v59 }
 0x1a5   : > { %v1352_v43 = vpop.f32.mrf.mxu1 }
 0x1a6   : > { %1025 = vst [vmem:[%s1919_s12 + $0x70] sm:$0xff] %v1009_v51  ;;  %v1007_v45 = vmax.f32 %v981_v60, 0.0  ;;  %v992_v28 = vadd.f32 %v1352_v43, %v2400_v53 }
 0x1a7   : > { %v983_v2 = vpop.f32.mrf.mxu1 }
 0x1a8   : > { %1023 = vst [vmem:[%s1919_s12 + $0x60] sm:$0xff] %v1007_v45  ;;  %v1010_v42 = vmax.f32 %v992_v28, 0.0  ;;  %v984_v32 = vadd.f32 %v2400_v53, %v983_v2 }
 0x1aa   : > { %1026 = vst [vmem:[%s1919_s12 + $0x78] sm:$0xff] %v1010_v42  ;;  %v1008_v47 = vmax.f32 %v984_v32, 0.0 }
 0x1ac   : > { %1024 = vst [vmem:[%s1919_s12 + $0x68] sm:$0xff] %v1008_v47 }
 0x1ad   : > { %1598 = shalt.err (!%p1595_p11)
}
 0x1ae   : > { %s1599_s12 = scalar_lea.hbm %s2438_s15, 2048  ;;  %s1603_s16 = scalar_lea.hbm %s2502_s5, 8192 }
 0x1af   : > { %p1600_p1 = scmp.ne.s32.totalorder %s2438_s15, %s1599_s12  ;;  %p1604_p5 = scmp.lt.s32.totalorder %s2438_s15, %s2502_s5 }
 0x1b0   : > { %p1605_p6 = scmp.lt.s32.totalorder %s1603_s16, %s1599_s12 }
 0x1b1   : > { %p1601_p13 = pnand %p1600_p1, %p1779_p3 }
 0x1b2   : > { %p1606_p7 = por %p1605_p6, %p1604_p5 }
 0x1b3   : > { %p1602_p4 = pneg %p1601_p13 }
 0x1b5   : > { %p1607_p8 = pnand %p1606_p7, %p1602_p4 }
 0x1b7   : > { %1610 = shalt.err (!%p1607_p8)
}
 0x1b8   : > { %s1695_s9 = smov 128   ;;  %s1696_s14 = smov 8  }
 0x1b9   : > { %1381 = dma.vmem_to_hbm [thread:$0]  (%p1779_p3), %s2440_s22, 2048, %s2438_s15, %s2446_s3, %s1695_s9, %s1695_s9, %s1696_s14  }
 0x1ba PF: > { %p1400_p10 = scmp.ge.s32.totalorder %s1687_s25, 2  ;;  %s1058_s17 = sand.u32 1, %s1659_s18  }
 0x1bb   : > { %p2545_p2 = scmp.ne.s32.totalorder %s2523_s8, 0  ;;  %s1059_s21 = scalar_lea.sflag [#allocation6], %s1058_s17 }
 0x1bd   : > { %p1391_p9 = pnand %p1400_p10, %p2545_p2 }
 0x1bf   : > { %p1392_p12 = pneg %p1391_p9 }
 0x1c1   : > { %1654 = dma.done.wait (%p1392_p12), %s1059_s21, 2048  }
 0x1c2   : > { %1656 = vsyncadd (%p1392_p12), %s1059_s21, 4294965248  ;;  %s20_s25 = sadd.s32 1, %s1687_s25   ;;  %s2546_s21 = sld [smem:[#allocation20_spill]] }
 0x1c3   : > { %p17_p0 = scmp.ge.s32.totalorder %s20_s25, 6   ;;  %s2547_s22 = sld [smem:[#allocation21_spill]] }
 0x1c4   : > { %s2548_s23 = sld [smem:[#allocation22_spill]]  ;;  %s2550_s18 = smov %s1663_s19 }
 0x1c5   : > { %s2549_s24 = sld [smem:[#allocation23_spill]]  ;;  %s2551_s19 = smov %s1667_s20 }
 0x1c6   : > { %s2552_s20 = smov %s1806_s13  ;;  %19 = sbr.rel (!%p17_p0) target bundleno = 10 (0xa), region = 104 }
 0x1cb   :  { %1064 = vsyncpa [#allocation5], 1 }
 0x1cc   :  { %1066 = vsyncpa [#allocation5 + $0x1], 1 }
 0x1cd   :  { %1067 = vsyncpa [#allocation8], 1 }
 0x1ce   :  { %1068 = vsyncpa [#allocation6], 1 }
 0x1cf   :  { %1070 = vsyncpa [#allocation6 + $0x1], 1 }
 0x1d0   :  { %1071 = vsyncmov [#allocation3] }
 0x1d3   :  { %s1072_s7 = vpop.sfrf %1071 }
 0x1d4   :  { %p1302_p3 = scmp.ne.s32.totalorder %s1072_s7, 0 }
 0x1d6   :  { %1076 = shalt.err (%p1302_p3)  }
 0x1d7   :  { %1078 = vsyncmov [#allocation3 + $0x1] }
 0x1da   :  { %s1079_s8 = vpop.sfrf %1078 }
 0x1db   :  { %p1303_p11 = scmp.ne.s32.totalorder %s1079_s8, 0 }
 0x1dd   :  { %1083 = shalt.err (%p1303_p11)  }

</bundles_post_ra>
